<compile_context>
chip_gen: v6e
topology: v6e:2x2x1
jax: 0.10.0
libtpu: 0.0.40
codegen_flags: <defaults>
</compile_context>

<pallas_src>
import functools

import jax
import jax.numpy as jnp
from jax.experimental import pallas as pl
from jax.experimental.pallas import tpu as pltpu


def _emb_gen_kernel(x_ref, w1_ref, b1_ref, w2_ref, b2_ref, w3_ref, b3_ref,
                    *rest, apply_dropout):
    if apply_dropout:
        mask_ref, o_ref = rest
    else:
        (o_ref,) = rest

    # x already has the Gaussian "Sampling" noise folded in (wrapper).
    x = x_ref[...]

    # fc1 + relu  (bf16 MXU operands, f32 accumulation, f32 VPU elementwise)
    h1 = jnp.dot(x.astype(jnp.bfloat16), w1_ref[...],
                 preferred_element_type=jnp.float32) + b1_ref[...]
    h1 = jnp.maximum(h1, 0.0)

    # fc2 + relu
    h2 = jnp.dot(h1.astype(jnp.bfloat16), w2_ref[...],
                 preferred_element_type=jnp.float32) + b2_ref[...]
    h2 = jnp.maximum(h2, 0.0)

    # dropout (training mode only; static Python branch). mask already holds
    # {0, 1/keep_prob} so a single multiply suffices.
    if apply_dropout:
        h2 = h2 * mask_ref[...]

    # fc_flat + tanh
    y = jnp.dot(h2.astype(jnp.bfloat16), w3_ref[...],
                preferred_element_type=jnp.float32) + b3_ref[...]
    o_ref[...] = jnp.tanh(y).astype(o_ref.dtype)


def _round_up(n, m):
    return ((n + m - 1) // m) * m


def emb_generator_forward(x, params, key, *, dropout_p, training,
                          batch_tile=128):
    """EmbGenerator forward via one fused Pallas kernel.

    x:      (B, latent_dim) float32
    params: w1 (L,256), b1 (1,256), w2 (256,2048), b2 (1,2048),
            w3 (2048, OUT), b3 (1, OUT)   with OUT = num_pred * feat_shape
    key:    jax.random key for the Gaussian noise and the dropout mask.
    """
    B, L = x.shape
    H1 = params["w1"].shape[1]
    H2 = params["w2"].shape[1]
    OUT = params["w3"].shape[1]

    apply_dropout = bool(training) and float(dropout_p) > 0.0
    keep_prob = 1.0 - float(dropout_p)

    k_noise, k_drop = jax.random.split(key)

    # Sampling: x + N(0, 1)  (done elementwise before the kernel; tiny).
    x = x + jax.random.normal(k_noise, x.shape, dtype=x.dtype)

    # MXU operands in bf16.
    w1 = params["w1"].astype(jnp.bfloat16)
    w2 = params["w2"].astype(jnp.bfloat16)
    w3 = params["w3"].astype(jnp.bfloat16)
    b1, b2, b3 = params["b1"], params["b2"], params["b3"]

    # Lane-dense output: pad OUT up to a multiple of 128, slice afterwards.
    OUT_pad = _round_up(OUT, 128)
    if OUT_pad != OUT:
        w3 = jnp.pad(w3, ((0, 0), (0, OUT_pad - OUT)))
        b3 = jnp.pad(b3, ((0, 0), (0, OUT_pad - OUT)))

    # Pick an MXU-friendly batch tile (multiple of 8) and pad the batch.
    batch_tile = max(8, min(batch_tile, _round_up(B, 8)))
    batch_tile = _round_up(batch_tile, 8)
    B_pad = _round_up(B, batch_tile)
    if B_pad != B:
        x = jnp.pad(x, ((0, B_pad - B), (0, 0)))
    grid = (B_pad // batch_tile,)

    def tile_spec(feat):
        return pl.BlockSpec((batch_tile, feat), lambda i: (i, 0))

    def full_spec(r, c):
        # Weights/biases never change across the grid (constant index_map),
        # so they stay resident in VMEM.
        return pl.BlockSpec((r, c), lambda i: (0, 0))

    in_specs = [
        tile_spec(L),             # x            (f32, noise added)
        full_spec(L, H1),         # w1           (bf16)
        full_spec(1, H1),         # b1           (f32)
        full_spec(H1, H2),        # w2           (bf16)
        full_spec(1, H2),         # b2           (f32)
        full_spec(H2, OUT_pad),   # w3           (bf16, padded)
        full_spec(1, OUT_pad),    # b3           (f32, padded)
    ]
    args = [x, w1, b1, w2, b2, w3, b3]

    if apply_dropout:
        keep = jax.random.bernoulli(k_drop, keep_prob, (B_pad, H2))
        mask = keep.astype(jnp.float32) * (1.0 / keep_prob)
        in_specs.append(tile_spec(H2))   # dropout keep-mask (f32, pre-scaled)
        args.append(mask)

    kernel = functools.partial(_emb_gen_kernel, apply_dropout=apply_dropout)

    out = pl.pallas_call(
        kernel,
        out_shape=jax.ShapeDtypeStruct((B_pad, OUT_pad), x.dtype),
        grid=grid,
        in_specs=in_specs,
        out_specs=tile_spec(OUT_pad),
        compiler_params=pltpu.CompilerParams(
            dimension_semantics=("parallel",),
            vmem_limit_bytes=48 * 1024 * 1024),
    )(*args)

    return out[:B, :OUT]


def init_params(key, latent_dim, num_pred, feat_shape):
    """Deterministic synthetic parameter init (uniform, nn.Linear default scale)."""
    dims = [(latent_dim, 256), (256, 2048), (2048, num_pred * feat_shape)]
    params = {}
    keys = jax.random.split(key, 2 * len(dims))
    for idx, (fan_in, fan_out) in enumerate(dims):
        bound = 1.0 / jnp.sqrt(fan_in)
        w = jax.random.uniform(keys[2 * idx], (fan_in, fan_out),
                               minval=-bound, maxval=bound, dtype=jnp.float32)
        b = jax.random.uniform(keys[2 * idx + 1], (1, fan_out),
                               minval=-bound, maxval=bound, dtype=jnp.float32)
        params[f"w{idx + 1}"] = w
        params[f"b{idx + 1}"] = b
    return params


if __name__ == "__main__":
    # Small, module-consistent shapes: OUT = num_pred * feat_shape = 64,
    # padded to 128 inside the wrapper.
    batch = 16
    latent_dim = 32
    num_pred = 4
    feat_shape = 16
    dropout_p = 0.5

    root = jax.random.PRNGKey(0)
    k_param, k_x, k_run = jax.random.split(root, 3)

    params = init_params(k_param, latent_dim, num_pred, feat_shape)
    x = jax.random.normal(k_x, (batch, latent_dim), dtype=jnp.float32)

    fwd = jax.jit(functools.partial(
        emb_generator_forward,
        dropout_p=dropout_p,
        training=True))          # nn.Module default mode
    y = fwd(x, params, k_run)
    jax.block_until_ready(y)

    assert y.shape == (batch, num_pred * feat_shape)
    assert bool(jnp.all(jnp.isfinite(y)))
    assert bool(jnp.all(jnp.abs(y) <= 1.0))   # tanh range
    print("KERNEL_OK")
</pallas_src>

<mosaic_0001>
module attributes {stable_mosaic.version = 11 : i64} {
  func.func @_emb_gen_kernel(%arg0: i32, %arg1: memref<16x32xf32, #tpu.memory_space<vmem>>, %arg2: memref<32x256xbf16, #tpu.memory_space<vmem>>, %arg3: memref<1x256xf32, #tpu.memory_space<vmem>>, %arg4: memref<256x2048xbf16, #tpu.memory_space<vmem>>, %arg5: memref<1x2048xf32, #tpu.memory_space<vmem>>, %arg6: memref<2048x128xbf16, #tpu.memory_space<vmem>>, %arg7: memref<1x128xf32, #tpu.memory_space<vmem>>, %arg8: memref<16x2048xf32, #tpu.memory_space<vmem>>, %arg9: memref<16x128xf32, #tpu.memory_space<vmem>>) attributes {dimension_semantics = [#tpu.dimension_semantics<parallel>], iteration_bounds = array<i64: 1>, scalar_prefetch = 0 : i64, scratch_operands = 0 : i64, tpu.core_type = #tpu.core_type<tc>, window_params = [{transform_indices = @transform_0, window_bounds = array<i64: 16, 32>}, {pipeline_mode = #tpu.pipeline_mode<synchronous>, transform_indices = @transform_1, window_bounds = array<i64: 32, 256>}, {pipeline_mode = #tpu.pipeline_mode<synchronous>, transform_indices = @transform_2, window_bounds = array<i64: 1, 256>}, {pipeline_mode = #tpu.pipeline_mode<synchronous>, transform_indices = @transform_3, window_bounds = array<i64: 256, 2048>}, {pipeline_mode = #tpu.pipeline_mode<synchronous>, transform_indices = @transform_4, window_bounds = array<i64: 1, 2048>}, {pipeline_mode = #tpu.pipeline_mode<synchronous>, transform_indices = @transform_5, window_bounds = array<i64: 2048, 128>}, {pipeline_mode = #tpu.pipeline_mode<synchronous>, transform_indices = @transform_6, window_bounds = array<i64: 1, 128>}, {transform_indices = @transform_7, window_bounds = array<i64: 16, 2048>}, {transform_indices = @transform_8, window_bounds = array<i64: 16, 128>}]} {
    %c0 = arith.constant 0 : index
    %c0_0 = arith.constant 0 : index
    %0 = vector.load %arg1[%c0, %c0_0] : memref<16x32xf32, #tpu.memory_space<vmem>>, vector<16x32xf32>
    %1 = arith.truncf %0 : vector<16x32xf32> to vector<16x32xbf16>
    %c0_1 = arith.constant 0 : index
    %c0_2 = arith.constant 0 : index
    %2 = vector.load %arg2[%c0_1, %c0_2] : memref<32x256xbf16, #tpu.memory_space<vmem>>, vector<32x256xbf16>
    %cst = arith.constant dense<0.000000e+00> : vector<16x256xf32>
    %3 = tpu.matmul %1, %2, %cst {dimension_numbers = #tpu.dot_dimension_numbers<[1], [0], [0], [1], [0, 0, 1, 1], [], []>} : vector<16x32xbf16>, vector<32x256xbf16>, vector<16x256xf32> -> vector<16x256xf32>
    %c0_3 = arith.constant 0 : index
    %c0_4 = arith.constant 0 : index
    %4 = vector.load %arg3[%c0_3, %c0_4] : memref<1x256xf32, #tpu.memory_space<vmem>>, vector<1x256xf32>
    %5 = vector.broadcast %4 : vector<1x256xf32> to vector<16x256xf32>
    %6 = arith.addf %3, %5 : vector<16x256xf32>
    %cst_5 = arith.constant 0.000000e+00 : f32
    %7 = vector.broadcast %cst_5 : f32 to vector<16x256xf32>
    %8 = arith.maximumf %6, %7 : vector<16x256xf32>
    %9 = arith.truncf %8 : vector<16x256xf32> to vector<16x256xbf16>
    %c0_6 = arith.constant 0 : index
    %c0_7 = arith.constant 0 : index
    %10 = vector.load %arg4[%c0_6, %c0_7] : memref<256x2048xbf16, #tpu.memory_space<vmem>>, vector<256x2048xbf16>
    %cst_8 = arith.constant dense<0.000000e+00> : vector<16x2048xf32>
    %11 = tpu.matmul %9, %10, %cst_8 {dimension_numbers = #tpu.dot_dimension_numbers<[1], [0], [0], [1], [0, 0, 1, 1], [], []>} : vector<16x256xbf16>, vector<256x2048xbf16>, vector<16x2048xf32> -> vector<16x2048xf32>
    %c0_9 = arith.constant 0 : index
    %c0_10 = arith.constant 0 : index
    %12 = vector.load %arg5[%c0_9, %c0_10] : memref<1x2048xf32, #tpu.memory_space<vmem>>, vector<1x2048xf32>
    %13 = vector.broadcast %12 : vector<1x2048xf32> to vector<16x2048xf32>
    %14 = arith.addf %11, %13 : vector<16x2048xf32>
    %cst_11 = arith.constant 0.000000e+00 : f32
    %15 = vector.broadcast %cst_11 : f32 to vector<16x2048xf32>
    %16 = arith.maximumf %14, %15 : vector<16x2048xf32>
    %c0_12 = arith.constant 0 : index
    %c0_13 = arith.constant 0 : index
    %17 = vector.load %arg8[%c0_12, %c0_13] : memref<16x2048xf32, #tpu.memory_space<vmem>>, vector<16x2048xf32>
    %18 = arith.mulf %16, %17 : vector<16x2048xf32>
    %19 = arith.truncf %18 : vector<16x2048xf32> to vector<16x2048xbf16>
    %c0_14 = arith.constant 0 : index
    %c0_15 = arith.constant 0 : index
    %20 = vector.load %arg6[%c0_14, %c0_15] : memref<2048x128xbf16, #tpu.memory_space<vmem>>, vector<2048x128xbf16>
    %cst_16 = arith.constant dense<0.000000e+00> : vector<16x128xf32>
    %21 = tpu.matmul %19, %20, %cst_16 {dimension_numbers = #tpu.dot_dimension_numbers<[1], [0], [0], [1], [0, 0, 1, 1], [], []>} : vector<16x2048xbf16>, vector<2048x128xbf16>, vector<16x128xf32> -> vector<16x128xf32>
    %c0_17 = arith.constant 0 : index
    %c0_18 = arith.constant 0 : index
    %22 = vector.load %arg7[%c0_17, %c0_18] : memref<1x128xf32, #tpu.memory_space<vmem>>, vector<1x128xf32>
    %23 = vector.broadcast %22 : vector<1x128xf32> to vector<16x128xf32>
    %24 = arith.addf %21, %23 : vector<16x128xf32>
    %25 = math.tanh %24 : vector<16x128xf32>
    %c0_19 = arith.constant 0 : index
    %c0_20 = arith.constant 0 : index
    %26 = vector.load %arg9[%c0_19, %c0_20] : memref<16x128xf32, #tpu.memory_space<vmem>>, vector<16x128xf32>
    tpu.vector_store %arg9[%c0_19, %c0_20], %25 {strides = array<i32>} : memref<16x128xf32, #tpu.memory_space<vmem>>, vector<16x128xf32>,
    return
  }
  func.func @transform_0(%arg0: i32) -> (i32, i32) {
    %c0_i32 = arith.constant 0 : i32
    %c0_i32_0 = arith.constant 0 : i32
    return %arg0, %c0_i32 : i32, i32
  }
  func.func @transform_1(%arg0: i32) -> (i32, i32) {
    %c0_i32 = arith.constant 0 : i32
    %c0_i32_0 = arith.constant 0 : i32
    %c0_i32_1 = arith.constant 0 : i32
    return %c0_i32, %c0_i32_0 : i32, i32
  }
  func.func @transform_2(%arg0: i32) -> (i32, i32) {
    %c0_i32 = arith.constant 0 : i32
    %c0_i32_0 = arith.constant 0 : i32
    %c0_i32_1 = arith.constant 0 : i32
    return %c0_i32, %c0_i32_0 : i32, i32
  }
  func.func @transform_3(%arg0: i32) -> (i32, i32) {
    %c0_i32 = arith.constant 0 : i32
    %c0_i32_0 = arith.constant 0 : i32
    %c0_i32_1 = arith.constant 0 : i32
    return %c0_i32, %c0_i32_0 : i32, i32
  }
  func.func @transform_4(%arg0: i32) -> (i32, i32) {
    %c0_i32 = arith.constant 0 : i32
    %c0_i32_0 = arith.constant 0 : i32
    %c0_i32_1 = arith.constant 0 : i32
    return %c0_i32, %c0_i32_0 : i32, i32
  }
  func.func @transform_5(%arg0: i32) -> (i32, i32) {
    %c0_i32 = arith.constant 0 : i32
    %c0_i32_0 = arith.constant 0 : i32
    %c0_i32_1 = arith.constant 0 : i32
    return %c0_i32, %c0_i32_0 : i32, i32
  }
  func.func @transform_6(%arg0: i32) -> (i32, i32) {
    %c0_i32 = arith.constant 0 : i32
    %c0_i32_0 = arith.constant 0 : i32
    %c0_i32_1 = arith.constant 0 : i32
    return %c0_i32, %c0_i32_0 : i32, i32
  }
  func.func @transform_7(%arg0: i32) -> (i32, i32) {
    %c0_i32 = arith.constant 0 : i32
    %c0_i32_0 = arith.constant 0 : i32
    return %arg0, %c0_i32 : i32, i32
  }
  func.func @transform_8(%arg0: i32) -> (i32, i32) {
    %c0_i32 = arith.constant 0 : i32
    %c0_i32_0 = arith.constant 0 : i32
    return %arg0, %c0_i32 : i32, i32
  }
}

</mosaic_0001>

<bundles_post_ra>
// kernel: emb_generator_forward.3
= control target key start
LH: loop header
LB: loop body
LE: loop exit
PB: predicated region body
PF: predicated region fallthrough
CT: control target
= control target key end

     0   :  { %v4308_v2 = vmov 0   ;;  %vm70_vm0 = vcmask 261120   ;;  %s5728_s0 = inlined_call_operand.vmem [shape: f32[16,32], index: 0, kind: input, shape index: {}]   ;;  %s5729_s1 = inlined_call_operand.vmem [shape: bf16[32,256], index: 1, kind: input, shape index: {}]   ;;  %s5730_s2 = inlined_call_operand.vmem [shape: f32[1,256], index: 2, kind: input, shape index: {}]   ;;  %s5731_s3 = inlined_call_operand.vmem [shape: bf16[256,2048], index: 3, kind: input, shape index: {}]   ;;  %s5732_s4 = inlined_call_operand.vmem [shape: f32[1,2048], index: 4, kind: input, shape index: {}]   ;;  %s5733_s5 = inlined_call_operand.vmem [shape: bf16[2048,128], index: 5, kind: input, shape index: {}]   ;;  %s5734_s6 = inlined_call_operand.vmem [shape: f32[1,128], index: 6, kind: input, shape index: {}]   ;;  %s5735_s7 = inlined_call_operand.vmem [shape: f32[16,2048], index: 7, kind: input, shape index: {}]   ;;  %s5736_s8 = inlined_call_operand.hbm [shape: f32[16,128], index: 8, kind: output, shape index: {}]  }
   0x1   :  { %v4148_v0 = vld [vmem:[%s5729_s1 + $0x14] ss:$8 sps:$4 sm:$0xff]   ;;  %v4150_v1 = vld [vmem:[%s5729_s1 + $0x10] ss:$8 sps:$4 sm:$0xff]   ;;  %106 = vmatprep.mubr.bf16.mxu0 %v4308_v2  ;;  %v4151_v3 = vld [vmem:[%s5729_s1 + $0x4] ss:$8 sps:$4 sm:$0xff]  }
   0x2   :  { %86 = vmatprep.subr.bf16.mxu0 %v4148_v0  ;;  %v4153_v4 = vld [vmem:[%s5729_s1] ss:$8 sps:$4 sm:$0xff]  }
   0x3   :  { %v31_v5 = vld [vmem:[%s5728_s0] sm:$0xff]  ;;  %87 = vmatpush1.bf16.msra.mxu0 %v4150_v1  ;;  %v32_v6 = vld [vmem:[%s5728_s0 + $0x8] sm:$0xff] }
   0x4   :  { %v235_v7 = vld [vmem:[%s5731_s3 + $0x380] sm:$0xff]  ;;  %88 = vmatprep.subr.bf16.mxu0 %v4151_v3  ;;  %v236_v10 = vld [vmem:[%s5731_s3 + $0x388] sm:$0xff]  ;;  %v33_v18 = vpack.c.bf16 %v32_v6, %v31_v5 }
   0x5   :  { %v243_v8 = vld [vmem:[%s5731_s3 + $0x3c0] sm:$0xff]  ;;  %v244_v11 = vld [vmem:[%s5731_s3 + $0x3c8] sm:$0xff] }
   0x6   :  { %v3696_v9 = vcombine.high %v235_v7, %v243_v8  ;;  %v3695_v12 = vcombine.low %v235_v7, %v243_v8  ;;  %v219_v13 = vld [vmem:[%s5731_s3 + $0x300] sm:$0xff]  ;;  %v3698_v14 = vcombine.high %v236_v10, %v244_v11  ;;  %v220_v16 = vld [vmem:[%s5731_s3 + $0x308] sm:$0xff]  ;;  %v3697_v22 = vcombine.low %v236_v10, %v244_v11 }
   0x7   :  { %v227_v15 = vld [vmem:[%s5731_s3 + $0x340] sm:$0xff]  ;;  %v228_v17 = vld [vmem:[%s5731_s3 + $0x348] sm:$0xff]  ;;  %89 = vmatpush1.bf16.msra.mxu0 %v4153_v4 }
   0x8   :  { %1743 = vmatprep.subr.bf16.mxu1 %v3696_v9  ;;  %v3680_v19 = vcombine.high %v219_v13, %v227_v15  ;;  %v203_v20 = vld [vmem:[%s5731_s3 + $0x280] sm:$0xff]  ;;  %v3679_v23 = vcombine.low %v219_v13, %v227_v15  ;;  %1786 = vmatprep.subr.bf16.mxu0 %v3698_v14  ;;  %v3682_v24 = vcombine.high %v220_v16, %v228_v17  ;;  %v204_v26 = vld [vmem:[%s5731_s3 + $0x288] sm:$0xff] }
   0x9   :  { %v211_v21 = vld [vmem:[%s5731_s3 + $0x2c0] sm:$0xff]  ;;  %1744 = vmatpush1.bf16.msra.mxu1 %v3695_v12  ;;  %v212_v27 = vld [vmem:[%s5731_s3 + $0x2c8] sm:$0xff]  ;;  %v3681_v30 = vcombine.low %v220_v16, %v228_v17 }
   0xa   :  { %1745 = vmatprep.subr.bf16.mxu1 %v3680_v19  ;;  %v3664_v25 = vcombine.high %v203_v20, %v211_v21  ;;  %v187_v28 = vld [vmem:[%s5731_s3 + $0x200] sm:$0xff]  ;;  %3582 = vmatmul.mubr.msk.bf16.vlgmr.msra.gmra.mxu0 %vm70_vm0, %v33_v18  ;;  %v3663_v31 = vcombine.low %v203_v20, %v211_v21  ;;  %v3666_v32 = vcombine.high %v204_v26, %v212_v27  ;;  %v188_v34 = vld [vmem:[%s5731_s3 + $0x208] sm:$0xff] }
   0xb   :  { %v195_v29 = vld [vmem:[%s5731_s3 + $0x240] sm:$0xff]  ;;  %1787 = vmatpush1.bf16.msra.mxu0 %v3697_v22  ;;  %v196_v35 = vld [vmem:[%s5731_s3 + $0x248] sm:$0xff]  ;;  %v3665_v38 = vcombine.low %v204_v26, %v212_v27 }
   0xc   :  { %1788 = vmatprep.subr.bf16.mxu0 %v3682_v24  ;;  %v3648_v33 = vcombine.high %v187_v28, %v195_v29  ;;  %v171_v36 = vld [vmem:[%s5731_s3 + $0x180] sm:$0xff]  ;;  %v3647_v39 = vcombine.low %v187_v28, %v195_v29  ;;  %v3650_v40 = vcombine.high %v188_v34, %v196_v35  ;;  %v172_v42 = vld [vmem:[%s5731_s3 + $0x188] sm:$0xff]  ;;  %v3649_v46 = vcombine.low %v188_v34, %v196_v35 }
   0xd   :  { %1746 = vmatpush1.bf16.msra.mxu1 %v3679_v23  ;;  %v179_v37 = vld [vmem:[%s5731_s3 + $0x1c0] sm:$0xff]  ;;  %v180_v43 = vld [vmem:[%s5731_s3 + $0x1c8] sm:$0xff] }
   0xe   :  { %1747 = vmatprep.subr.bf16.mxu1 %v3664_v25  ;;  %v3632_v41 = vcombine.high %v171_v36, %v179_v37  ;;  %v155_v44 = vld [vmem:[%s5731_s3 + $0x100] sm:$0xff]  ;;  %v3631_v47 = vcombine.low %v171_v36, %v179_v37  ;;  %v156_v48 = vld [vmem:[%s5731_s3 + $0x108] sm:$0xff]  ;;  %v3634_v49 = vcombine.high %v172_v42, %v180_v43  ;;  %v3633_v54 = vcombine.low %v172_v42, %v180_v43 }
   0xf   :  { %1789 = vmatpush1.bf16.msra.mxu0 %v3681_v30  ;;  %v163_v45 = vld [vmem:[%s5731_s3 + $0x140] sm:$0xff]  ;;  %v164_v51 = vld [vmem:[%s5731_s3 + $0x148] sm:$0xff] }
  0x10   :  { %1790 = vmatprep.subr.bf16.mxu0 %v3666_v32  ;;  %v3616_v50 = vcombine.high %v155_v44, %v163_v45  ;;  %v139_v52 = vld [vmem:[%s5731_s3 + $0x80] sm:$0xff]  ;;  %v3615_v55 = vcombine.low %v155_v44, %v163_v45  ;;  %v140_v56 = vld [vmem:[%s5731_s3 + $0x88] sm:$0xff]  ;;  %v3618_v60 = vcombine.high %v156_v48, %v164_v51  ;;  %v3617_v62 = vcombine.low %v156_v48, %v164_v51 }
  0x11   :  { %1748 = vmatpush1.bf16.msra.mxu1 %v3663_v31  ;;  %v147_v53 = vld [vmem:[%s5731_s3 + $0xc0] sm:$0xff]  ;;  %v148_v57 = vld [vmem:[%s5731_s3 + $0xc8] sm:$0xff] }
  0x12   :  { %1749 = vmatprep.subr.bf16.mxu1 %v3648_v33  ;;  %v123_v58 = vld [vmem:[%s5731_s3] sm:$0xff]  ;;  %v3600_v61 = vcombine.high %v139_v52, %v147_v53  ;;  %v3599_v63 = vcombine.low %v139_v52, %v147_v53  ;;  %v124_v0 = vld [vmem:[%s5731_s3 + $0x8] sm:$0xff]  ;;  %v3602_v4 = vcombine.high %v140_v56, %v148_v57  ;;  %v3601_v6 = vcombine.low %v140_v56, %v148_v57 }
  0x13   :  { %1791 = vmatpush1.bf16.msra.mxu0 %v3665_v38  ;;  %v131_v59 = vld [vmem:[%s5731_s3 + $0x40] sm:$0xff]  ;;  %v132_v1 = vld [vmem:[%s5731_s3 + $0x48] sm:$0xff] }
  0x14   :  { %1792 = vmatprep.subr.bf16.mxu0 %v3650_v40  ;;  %v363_v2 = vld [vmem:[%s5731_s3 + $0x780] sm:$0xff]  ;;  %v3584_v5 = vcombine.high %v123_v58, %v131_v59  ;;  %v3583_v7 = vcombine.low %v123_v58, %v131_v59  ;;  %v364_v8 = vld [vmem:[%s5731_s3 + $0x788] sm:$0xff]  ;;  %v3586_v12 = vcombine.high %v124_v0, %v132_v1  ;;  %v3585_v14 = vcombine.low %v124_v0, %v132_v1 }
  0x15   :  { %1750 = vmatpush1.bf16.msra.mxu1 %v3647_v39  ;;  %v371_v3 = vld [vmem:[%s5731_s3 + $0x7c0] sm:$0xff]  ;;  %v372_v9 = vld [vmem:[%s5731_s3 + $0x7c8] sm:$0xff] }
  0x16   :  { %1751 = vmatprep.subr.bf16.mxu1 %v3632_v41  ;;  %v347_v10 = vld [vmem:[%s5731_s3 + $0x700] sm:$0xff]  ;;  %v3824_v13 = vcombine.high %v363_v2, %v371_v3  ;;  %v3823_v15 = vcombine.low %v363_v2, %v371_v3  ;;  %v348_v16 = vld [vmem:[%s5731_s3 + $0x708] sm:$0xff]  ;;  %v3826_v20 = vcombine.high %v364_v8, %v372_v9  ;;  %v3825_v22 = vcombine.low %v364_v8, %v372_v9  ;;  %v237_v8 = vld [vmem:[%s5731_s3 + $0x390] sm:$0xff] }
  0x17   :  { %1793 = vmatpush1.bf16.msra.mxu0 %v3649_v46  ;;  %v355_v11 = vld [vmem:[%s5731_s3 + $0x740] sm:$0xff]  ;;  %v356_v17 = vld [vmem:[%s5731_s3 + $0x748] sm:$0xff]  ;;  %v245_v9 = vld [vmem:[%s5731_s3 + $0x3d0] sm:$0xff] }
  0x18   :  { %1794 = vmatprep.subr.bf16.mxu0 %v3634_v49  ;;  %v331_v18 = vld [vmem:[%s5731_s3 + $0x680] sm:$0xff]  ;;  %v3808_v21 = vcombine.high %v347_v10, %v355_v11  ;;  %v3807_v23 = vcombine.low %v347_v10, %v355_v11  ;;  %v332_v24 = vld [vmem:[%s5731_s3 + $0x688] sm:$0xff]  ;;  %v3810_v28 = vcombine.high %v348_v16, %v356_v17  ;;  %v3809_v30 = vcombine.low %v348_v16, %v356_v17  ;;  %v238_v10 = vld [vmem:[%s5731_s3 + $0x398] sm:$0xff] }
  0x19   :  { %1752 = vmatpush1.bf16.msra.mxu1 %v3631_v47  ;;  %v339_v19 = vld [vmem:[%s5731_s3 + $0x6c0] sm:$0xff]  ;;  %v340_v25 = vld [vmem:[%s5731_s3 + $0x6c8] sm:$0xff]  ;;  %v3700_v11 = vcombine.high %v237_v8, %v245_v9 }
  0x1a   :  { %1753 = vmatprep.subr.bf16.mxu1 %v3616_v50  ;;  %v315_v26 = vld [vmem:[%s5731_s3 + $0x600] sm:$0xff]  ;;  %v3792_v29 = vcombine.high %v331_v18, %v339_v19  ;;  %v3791_v31 = vcombine.low %v331_v18, %v339_v19  ;;  %v316_v32 = vld [vmem:[%s5731_s3 + $0x608] sm:$0xff]  ;;  %v3794_v36 = vcombine.high %v332_v24, %v340_v25  ;;  %v3793_v38 = vcombine.low %v332_v24, %v340_v25 }
  0x1b   :  { %1795 = vmatpush1.bf16.msra.mxu0 %v3633_v54  ;;  %v323_v27 = vld [vmem:[%s5731_s3 + $0x640] sm:$0xff]  ;;  %v324_v33 = vld [vmem:[%s5731_s3 + $0x648] sm:$0xff] }
  0x1c   :  { %1796 = vmatprep.subr.bf16.mxu0 %v3618_v60  ;;  %v299_v34 = vld [vmem:[%s5731_s3 + $0x580] sm:$0xff]  ;;  %v3776_v37 = vcombine.high %v315_v26, %v323_v27  ;;  %v3775_v39 = vcombine.low %v315_v26, %v323_v27  ;;  %v300_v40 = vld [vmem:[%s5731_s3 + $0x588] sm:$0xff]  ;;  %v3778_v42 = vcombine.high %v316_v32, %v324_v33  ;;  %v3777_v44 = vcombine.low %v316_v32, %v324_v33 }
  0x1d   :  { %1754 = vmatpush1.bf16.msra.mxu1 %v3615_v55  ;;  %v307_v35 = vld [vmem:[%s5731_s3 + $0x5c0] sm:$0xff]  ;;  %v308_v41 = vld [vmem:[%s5731_s3 + $0x5c8] sm:$0xff] }
  0x1e   :  { %1755 = vmatprep.subr.bf16.mxu1 %v3600_v61  ;;  %v3760_v43 = vcombine.high %v299_v34, %v307_v35  ;;  %v3759_v45 = vcombine.low %v299_v34, %v307_v35  ;;  %v3762_v46 = vcombine.high %v300_v40, %v308_v41  ;;  %v3761_v47 = vcombine.low %v300_v40, %v308_v41  ;;  %v283_v48 = vld [vmem:[%s5731_s3 + $0x500] sm:$0xff]  ;;  %v284_v50 = vld [vmem:[%s5731_s3 + $0x508] sm:$0xff] }
  0x1f   :  { %1797 = vmatpush1.bf16.msra.mxu0 %v3617_v62  ;;  %v291_v49 = vld [vmem:[%s5731_s3 + $0x540] sm:$0xff]  ;;  %v292_v52 = vld [vmem:[%s5731_s3 + $0x548] sm:$0xff] }
  0x20   :  { %1798 = vmatprep.subr.bf16.mxu0 %v3602_v4  ;;  %v3744_v51 = vcombine.high %v283_v48, %v291_v49  ;;  %v3745_v53 = vcombine.low %v284_v50, %v292_v52  ;;  %v3746_v54 = vcombine.high %v284_v50, %v292_v52  ;;  %v3743_v55 = vcombine.low %v283_v48, %v291_v49  ;;  %v267_v56 = vld [vmem:[%s5731_s3 + $0x480] sm:$0xff]  ;;  %v268_v58 = vld [vmem:[%s5731_s3 + $0x488] sm:$0xff] }
  0x21   :  { %1756 = vmatpush1.bf16.msra.mxu1 %v3599_v63  ;;  %v275_v57 = vld [vmem:[%s5731_s3 + $0x4c0] sm:$0xff]  ;;  %v276_v60 = vld [vmem:[%s5731_s3 + $0x4c8] sm:$0xff] }
  0x22   :  { %1757 = vmatprep.subr.bf16.mxu1 %v3584_v5  ;;  %v3728_v59 = vcombine.high %v267_v56, %v275_v57  ;;  %v3729_v61 = vcombine.low %v268_v58, %v276_v60  ;;  %v3730_v62 = vcombine.high %v268_v58, %v276_v60  ;;  %v3727_v63 = vcombine.low %v267_v56, %v275_v57  ;;  %v251_v0 = vld [vmem:[%s5731_s3 + $0x400] sm:$0xff]  ;;  %v252_v2 = vld [vmem:[%s5731_s3 + $0x408] sm:$0xff] }
  0x23   :  { %1799 = vmatpush1.bf16.msra.mxu0 %v3601_v6  ;;  %v259_v1 = vld [vmem:[%s5731_s3 + $0x440] sm:$0xff]  ;;  %v260_v4 = vld [vmem:[%s5731_s3 + $0x448] sm:$0xff] }
  0x24   :  { %1800 = vmatprep.subr.bf16.mxu0 %v3586_v12  ;;  %v3712_v3 = vcombine.high %v251_v0, %v259_v1  ;;  %v3713_v5 = vcombine.low %v252_v2, %v260_v4  ;;  %v3714_v6 = vcombine.high %v252_v2, %v260_v4  ;;  %v246_v12 = vld [vmem:[%s5731_s3 + $0x3d8] sm:$0xff] }
  0x25   :  { %1758 = vmatpush1.bf16.msra.mxu1 %v3583_v7  ;;  %v3711_v7 = vcombine.low %v251_v0, %v259_v1 }
  0x26   :  { %1759 = vmatprep.subr.bf16.mxu1 %v3824_v13  ;;  %v3699_v13 = vcombine.low %v237_v8, %v245_v9 }
  0x27   :  { %1801 = vmatpush1.bf16.msra.mxu0 %v3585_v14  ;;  %v3701_v14 = vcombine.low %v238_v10, %v246_v12 }
  0x28   :  { %1802 = vmatprep.subr.bf16.mxu0 %v3826_v20 }
  0x29   :  { %1760 = vmatpush2.bf16.msra.mxu1 %v3823_v15  ;;  %v3702_v15 = vcombine.high %v238_v10, %v246_v12 }
  0x2a   :  { %1761 = vmatprep.subr.bf16.mxu1 %v3808_v21 }
  0x2b   :  { %1803 = vmatpush2.bf16.msra.mxu0 %v3825_v22 }
  0x2c   :  { %1804 = vmatprep.subr.bf16.mxu0 %v3810_v28 }
  0x2d   :  { %1762 = vmatpush2.bf16.msra.mxu1 %v3807_v23 }
  0x2e   :  { %1763 = vmatprep.subr.bf16.mxu1 %v3792_v29 }
  0x2f   :  { %1805 = vmatpush2.bf16.msra.mxu0 %v3809_v30 }
  0x30   :  { %1806 = vmatprep.subr.bf16.mxu0 %v3794_v36 }
  0x31   :  { %1764 = vmatpush2.bf16.msra.mxu1 %v3791_v31 }
  0x32   :  { %1765 = vmatprep.subr.bf16.mxu1 %v3776_v37 }
  0x33   :  { %1807 = vmatpush2.bf16.msra.mxu0 %v3793_v38 }
  0x34   :  { %1808 = vmatprep.subr.bf16.mxu0 %v3778_v42 }
  0x35   :  { %1766 = vmatpush2.bf16.msra.mxu1 %v3775_v39 }
  0x36   :  { %1767 = vmatprep.subr.bf16.mxu1 %v3760_v43 }
  0x37   :  { %1809 = vmatpush2.bf16.msra.mxu0 %v3777_v44 }
  0x38   :  { %1810 = vmatprep.subr.bf16.mxu0 %v3762_v46 }
  0x39   :  { %1768 = vmatpush2.bf16.msra.mxu1 %v3759_v45 }
  0x3a   :  { %1769 = vmatprep.subr.bf16.mxu1 %v3744_v51 }
  0x3b   :  { %1811 = vmatpush2.bf16.msra.mxu0 %v3761_v47 }
  0x3c   :  { %1812 = vmatprep.subr.bf16.mxu0 %v3746_v54 }
  0x3d   :  { %1770 = vmatpush2.bf16.msra.mxu1 %v3743_v55 }
  0x3e   :  { %1771 = vmatprep.subr.bf16.mxu1 %v3728_v59 }
  0x3f   :  { %1813 = vmatpush2.bf16.msra.mxu0 %v3745_v53 }
  0x40   :  { %1814 = vmatprep.subr.bf16.mxu0 %v3730_v62 }
  0x41   :  { %1772 = vmatpush2.bf16.msra.mxu1 %v3727_v63 }
  0x42   :  { %1773 = vmatprep.subr.bf16.mxu1 %v3712_v3 }
  0x43   :  { %1815 = vmatpush2.bf16.msra.mxu0 %v3729_v61 }
  0x44   :  { %1816 = vmatprep.subr.bf16.mxu0 %v3714_v6 }
  0x45   :  { %1774 = vmatpush2.bf16.msra.mxu1 %v3711_v7 }
  0x46   :  { %1829 = vmatprep.subr.bf16.mxu1 %v3700_v11 }
  0x47   :  { %1817 = vmatpush2.bf16.msra.mxu0 %v3713_v5 }
  0x48   :  { %1872 = vmatprep.subr.bf16.mxu0 %v3702_v15 }
  0x49   :  { %13 = vsyncpa [#allocation3], 0  ;;  %v40_v16 = vlaneseq  ;;  %v38_v20 = vld [vmem:[%s5730_s2] sm:$0x3]  ;;  %v221_v34 = vld [vmem:[%s5731_s3 + $0x310] sm:$0xff] }
  0x4a   :  { %v229_v36 = vld [vmem:[%s5731_s3 + $0x350] sm:$0xff]  ;;  %v222_v37 = vld [vmem:[%s5731_s3 + $0x318] sm:$0xff] }
  0x4b   :  { %v4579_v17 = vshrl.u32 %v40_v16, 7  ;;  %v230_v38 = vld [vmem:[%s5731_s3 + $0x358] sm:$0xff]  ;;  %v205_v41 = vld [vmem:[%s5731_s3 + $0x290] sm:$0xff]  ;;  %v3684_v42 = vcombine.high %v221_v34, %v229_v36  ;;  %v3683_v47 = vcombine.low %v221_v34, %v229_v36 }
  0x4c   :  { %v3686_v43 = vcombine.high %v222_v37, %v230_v38  ;;  %v213_v44 = vld [vmem:[%s5731_s3 + $0x2d0] sm:$0xff]  ;;  %v206_v45 = vld [vmem:[%s5731_s3 + $0x298] sm:$0xff]  ;;  %v3685_v48 = vcombine.low %v222_v37, %v230_v38 }
  0x4d   :  { %v4582_v18 = vsub.s32 1, %v4579_v17  ;;  %v4585_v19 = vsub.s32 0, %v4579_v17  ;;  %v214_v46 = vld [vmem:[%s5731_s3 + $0x2d8] sm:$0xff]  ;;  %v3668_v49 = vcombine.high %v205_v41, %v213_v44  ;;  %v189_v51 = vld [vmem:[%s5731_s3 + $0x210] sm:$0xff]  ;;  %v3667_v55 = vcombine.low %v205_v41, %v213_v44 }
  0x4e   :  { %v3670_v50 = vcombine.high %v206_v45, %v214_v46  ;;  %v197_v52 = vld [vmem:[%s5731_s3 + $0x250] sm:$0xff]  ;;  %v190_v53 = vld [vmem:[%s5731_s3 + $0x218] sm:$0xff]  ;;  %v3669_v56 = vcombine.low %v206_v45, %v214_v46 }
  0x4f   :  { %v47_v22 = vrot.slane %v38_v20, %v4582_v18  ;;  %v43_v23 = vrot.slane %v38_v20, %v4585_v19  ;;  %v198_v54 = vld [vmem:[%s5731_s3 + $0x258] sm:$0xff]  ;;  %v3652_v57 = vcombine.high %v189_v51, %v197_v52  ;;  %v173_v59 = vld [vmem:[%s5731_s3 + $0x190] sm:$0xff]  ;;  %v3651_v63 = vcombine.low %v189_v51, %v197_v52 }
  0x50   :  { %v3654_v58 = vcombine.high %v190_v53, %v198_v54  ;;  %v181_v60 = vld [vmem:[%s5731_s3 + $0x1d0] sm:$0xff]  ;;  %v174_v61 = vld [vmem:[%s5731_s3 + $0x198] sm:$0xff]  ;;  %v3653_v0 = vcombine.low %v190_v53, %v198_v54 }
  0x51   :  { %v182_v62 = vld [vmem:[%s5731_s3 + $0x1d8] sm:$0xff]  ;;  %v3636_v1 = vcombine.high %v173_v59, %v181_v60  ;;  %v157_v3 = vld [vmem:[%s5731_s3 + $0x110] sm:$0xff]  ;;  %v3635_v7 = vcombine.low %v173_v59, %v181_v60 }
  0x52   :  { %v3638_v2 = vcombine.high %v174_v61, %v182_v62  ;;  %v165_v4 = vld [vmem:[%s5731_s3 + $0x150] sm:$0xff]  ;;  %v158_v5 = vld [vmem:[%s5731_s3 + $0x118] sm:$0xff]  ;;  %v3637_v8 = vcombine.low %v174_v61, %v182_v62 }
  0x53   :  { %v166_v6 = vld [vmem:[%s5731_s3 + $0x158] sm:$0xff]  ;;  %v3620_v9 = vcombine.high %v157_v3, %v165_v4  ;;  %v141_v11 = vld [vmem:[%s5731_s3 + $0x90] sm:$0xff]  ;;  %v3619_v15 = vcombine.low %v157_v3, %v165_v4 }
  0x54   :  { %v3622_v10 = vcombine.high %v158_v5, %v166_v6  ;;  %v149_v12 = vld [vmem:[%s5731_s3 + $0xd0] sm:$0xff]  ;;  %v3621_v16 = vcombine.low %v158_v5, %v166_v6  ;;  %v342_v51 = vld [vmem:[%s5731_s3 + $0x6d8] sm:$0xff] }
  0x55   :  { %v3604_v20 = vcombine.high %v141_v11, %v149_v12  ;;  %v349_v38 = vld [vmem:[%s5731_s3 + $0x710] sm:$0xff]  ;;  %v326_v59 = vld [vmem:[%s5731_s3 + $0x658] sm:$0xff] }
  0x56   :  { %v357_v41 = vld [vmem:[%s5731_s3 + $0x750] sm:$0xff]  ;;  %v310_v3 = vld [vmem:[%s5731_s3 + $0x5d8] sm:$0xff] }
  0x57   :  { %v3812_v46 = vcombine.high %v349_v38, %v357_v41  ;;  %v3811_v52 = vcombine.low %v349_v38, %v357_v41  ;;  %v248_v38 = vld [vmem:[%s5731_s3 + $0x3e8] sm:$0xff] }
  0xca   :  { %v108_v21 = vpop.f32.mrf.mxu0 }
  0xcb   :  { %v109_v28 = vadd.f32 %v108_v21, %v43_v23 }
  0xcc   :  { %v110_v24 = vpop.f32.mrf.mxu0 }
  0xcd   :  { %v111_v26 = vadd.f32 %v110_v24, %v47_v22  ;;  %v117_v35 = vmax.f32 %v109_v28, 0.0  ;;  %v126_v24 = vld [vmem:[%s5731_s3 + $0x18] sm:$0xff] }
  0xce   :  { %v112_v25 = vpop.f32.mrf.mxu0 }
  0xcf   :  { %v113_v27 = vadd.f32 %v112_v25, %v43_v23  ;;  %v118_v32 = vmax.f32 %v111_v26, 0.0  ;;  %v133_v23 = vld [vmem:[%s5731_s3 + $0x50] sm:$0xff]  ;;  %v134_v25 = vld [vmem:[%s5731_s3 + $0x58] sm:$0xff]  ;;  %v3603_v26 = vcombine.low %v141_v11, %v149_v12 }
  0xd0   :  { %v114_v29 = vpop.f32.mrf.mxu0  ;;  %v294_v11 = vld [vmem:[%s5731_s3 + $0x558] sm:$0xff] }
  0xd1   :  { %v115_v30 = vadd.f32 %v114_v29, %v47_v22  ;;  %v119_v31 = vmax.f32 %v113_v27, 0.0  ;;  %v125_v22 = vld [vmem:[%s5731_s3 + $0x10] sm:$0xff]  ;;  %v3590_v29 = vcombine.high %v126_v24, %v134_v25 }
  0xd2   :  { %v3588_v28 = vcombine.high %v125_v22, %v133_v23  ;;  %v3587_v34 = vcombine.low %v125_v22, %v133_v23  ;;  %v278_v22 = vld [vmem:[%s5731_s3 + $0x4d8] sm:$0xff] }
  0xd3   :  { %v120_v33 = vmax.f32 %v115_v30, 0.0  ;;  %v4606_v40 = vpack.c.bf16 %v119_v31, %v117_v35  ;;  %v365_v30 = vld [vmem:[%s5731_s3 + $0x790] sm:$0xff]  ;;  %v3589_v35 = vcombine.low %v126_v24, %v134_v25 }
  0xd4   :  { %v373_v31 = vld [vmem:[%s5731_s3 + $0x7d0] sm:$0xff] }
  0xd5   :  { %v4604_v39 = vpack.c.bf16 %v120_v33, %v118_v32  ;;  %v366_v32 = vld [vmem:[%s5731_s3 + $0x798] sm:$0xff]  ;;  %v3828_v36 = vcombine.high %v365_v30, %v373_v31  ;;  %v3827_v44 = vcombine.low %v365_v30, %v373_v31 }
  0xd6   :  { %v374_v33 = vld [vmem:[%s5731_s3 + $0x7d8] sm:$0xff] }
  0xd7   :  { %1775 = vmatprep.mubr.bf16.mxu1 %v4604_v39  ;;  %1818 = vmatprep.mubr.bf16.mxu0 %v4604_v39  ;;  %v3830_v37 = vcombine.high %v366_v32, %v374_v33  ;;  %v3829_v45 = vcombine.low %v366_v32, %v374_v33  ;;  %v262_v30 = vld [vmem:[%s5731_s3 + $0x458] sm:$0xff] }
  0xd8   :  { %1776 = vmatmul.mubr.bf16.vlgmr.msra.gmra.mxu1 %v4606_v40  ;;  %1819 = vmatmul.mubr.bf16.vlgmr.msra.gmra.mxu0 %v4606_v40 }
  0xd9   :  { %1830 = vmatpush1.bf16.msra.mxu1 %v3699_v13  ;;  %1873 = vmatpush1.bf16.msra.mxu0 %v3701_v14  ;;  %v142_v13 = vld [vmem:[%s5731_s3 + $0x98] sm:$0xff] }
  0xda   :  { %1861 = vmatprep.mubr.bf16.mxu1 %v4604_v39  ;;  %1904 = vmatprep.mubr.bf16.mxu0 %v4604_v39  ;;  %v150_v14 = vld [vmem:[%s5731_s3 + $0xd8] sm:$0xff] }
  0xdb   :  { %1831 = vmatprep.subr.bf16.mxu1 %v3684_v42  ;;  %1874 = vmatprep.subr.bf16.mxu0 %v3686_v43  ;;  %v3606_v21 = vcombine.high %v142_v13, %v150_v14  ;;  %v3605_v27 = vcombine.low %v142_v13, %v150_v14  ;;  %v350_v42 = vld [vmem:[%s5731_s3 + $0x718] sm:$0xff] }
  0xdc   :  { %v358_v43 = vld [vmem:[%s5731_s3 + $0x758] sm:$0xff] }
  0xdd   :  { %1832 = vmatpush1.bf16.msra.mxu1 %v3683_v47  ;;  %1875 = vmatpush1.bf16.msra.mxu0 %v3685_v48  ;;  %v3814_v47 = vcombine.high %v350_v42, %v358_v43  ;;  %v333_v48 = vld [vmem:[%s5731_s3 + $0x690] sm:$0xff]  ;;  %v3813_v53 = vcombine.low %v350_v42, %v358_v43 }
  0xde   :  { %1833 = vmatprep.subr.bf16.mxu1 %v3668_v49  ;;  %1876 = vmatprep.subr.bf16.mxu0 %v3670_v50  ;;  %v341_v49 = vld [vmem:[%s5731_s3 + $0x6d0] sm:$0xff]  ;;  %v334_v50 = vld [vmem:[%s5731_s3 + $0x698] sm:$0xff] }
  0xdf   :  { %v3796_v54 = vcombine.high %v333_v48, %v341_v49  ;;  %v3795_v60 = vcombine.low %v333_v48, %v341_v49  ;;  %v3797_v61 = vcombine.low %v334_v50, %v342_v51  ;;  %v232_v48 = vld [vmem:[%s5731_s3 + $0x368] sm:$0xff] }
  0xe1   :  { %1834 = vmatpush1.bf16.msra.mxu1 %v3667_v55  ;;  %1877 = vmatpush1.bf16.msra.mxu0 %v3669_v56  ;;  %v3798_v55 = vcombine.high %v334_v50, %v342_v51  ;;  %v317_v56 = vld [vmem:[%s5731_s3 + $0x610] sm:$0xff] }
  0xe2   :  { %1835 = vmatprep.subr.bf16.mxu1 %v3652_v57  ;;  %1878 = vmatprep.subr.bf16.mxu0 %v3654_v58  ;;  %v325_v57 = vld [vmem:[%s5731_s3 + $0x650] sm:$0xff]  ;;  %v318_v58 = vld [vmem:[%s5731_s3 + $0x618] sm:$0xff] }
  0xe3   :  { %v3780_v62 = vcombine.high %v317_v56, %v325_v57  ;;  %v3779_v4 = vcombine.low %v317_v56, %v325_v57  ;;  %v3781_v5 = vcombine.low %v318_v58, %v326_v59  ;;  %v216_v56 = vld [vmem:[%s5731_s3 + $0x2e8] sm:$0xff] }
  0xe5   :  { %1836 = vmatpush1.bf16.msra.mxu1 %v3651_v63  ;;  %1879 = vmatpush1.bf16.msra.mxu0 %v3653_v0  ;;  %v3782_v63 = vcombine.high %v318_v58, %v326_v59  ;;  %v301_v0 = vld [vmem:[%s5731_s3 + $0x590] sm:$0xff] }
  0xe6   :  { %1837 = vmatprep.subr.bf16.mxu1 %v3636_v1  ;;  %1880 = vmatprep.subr.bf16.mxu0 %v3638_v2  ;;  %v309_v1 = vld [vmem:[%s5731_s3 + $0x5d0] sm:$0xff]  ;;  %v302_v2 = vld [vmem:[%s5731_s3 + $0x598] sm:$0xff] }
  0xe7   :  { %v3764_v6 = vcombine.high %v301_v0, %v309_v1  ;;  %v3763_v12 = vcombine.low %v301_v0, %v309_v1  ;;  %v3765_v13 = vcombine.low %v302_v2, %v310_v3  ;;  %v200_v0 = vld [vmem:[%s5731_s3 + $0x268] sm:$0xff] }
  0xe9   :  { %1838 = vmatpush1.bf16.msra.mxu1 %v3635_v7  ;;  %1881 = vmatpush1.bf16.msra.mxu0 %v3637_v8  ;;  %v3766_v7 = vcombine.high %v302_v2, %v310_v3  ;;  %v285_v8 = vld [vmem:[%s5731_s3 + $0x510] sm:$0xff] }
  0xea   :  { %1839 = vmatprep.subr.bf16.mxu1 %v3620_v9  ;;  %1882 = vmatprep.subr.bf16.mxu0 %v3622_v10  ;;  %v293_v9 = vld [vmem:[%s5731_s3 + $0x550] sm:$0xff]  ;;  %v286_v10 = vld [vmem:[%s5731_s3 + $0x518] sm:$0xff] }
  0xeb   :  { %v3748_v14 = vcombine.high %v285_v8, %v293_v9  ;;  %v3747_v23 = vcombine.low %v285_v8, %v293_v9  ;;  %v3749_v24 = vcombine.low %v286_v10, %v294_v11  ;;  %v184_v8 = vld [vmem:[%s5731_s3 + $0x1e8] sm:$0xff] }
  0xed   :  { %1840 = vmatpush1.bf16.msra.mxu1 %v3619_v15  ;;  %1883 = vmatpush1.bf16.msra.mxu0 %v3621_v16  ;;  %v3750_v15 = vcombine.high %v286_v10, %v294_v11  ;;  %v269_v16 = vld [vmem:[%s5731_s3 + $0x490] sm:$0xff] }
  0xee   :  { %1841 = vmatprep.subr.bf16.mxu1 %v3604_v20  ;;  %1884 = vmatprep.subr.bf16.mxu0 %v3606_v21  ;;  %v277_v20 = vld [vmem:[%s5731_s3 + $0x4d0] sm:$0xff]  ;;  %v270_v21 = vld [vmem:[%s5731_s3 + $0x498] sm:$0xff] }
  0xef   :  { %v3732_v25 = vcombine.high %v269_v16, %v277_v20  ;;  %v3731_v31 = vcombine.low %v269_v16, %v277_v20  ;;  %v3733_v32 = vcombine.low %v270_v21, %v278_v22  ;;  %v168_v16 = vld [vmem:[%s5731_s3 + $0x168] sm:$0xff] }
  0xf1   :  { %1842 = vmatpush1.bf16.msra.mxu1 %v3603_v26  ;;  %1885 = vmatpush1.bf16.msra.mxu0 %v3605_v27  ;;  %v3734_v26 = vcombine.high %v270_v21, %v278_v22  ;;  %v253_v27 = vld [vmem:[%s5731_s3 + $0x410] sm:$0xff] }
  0xf2   :  { %1843 = vmatprep.subr.bf16.mxu1 %v3588_v28  ;;  %1886 = vmatprep.subr.bf16.mxu0 %v3590_v29  ;;  %v261_v28 = vld [vmem:[%s5731_s3 + $0x450] sm:$0xff]  ;;  %v254_v29 = vld [vmem:[%s5731_s3 + $0x418] sm:$0xff] }
  0xf3   :  { %v3716_v33 = vcombine.high %v253_v27, %v261_v28  ;;  %v3715_v41 = vcombine.low %v253_v27, %v261_v28  ;;  %v3717_v42 = vcombine.low %v254_v29, %v262_v30  ;;  %v152_v27 = vld [vmem:[%s5731_s3 + $0xe8] sm:$0xff] }
  0xf5   :  { %1844 = vmatpush1.bf16.msra.mxu1 %v3587_v34  ;;  %1887 = vmatpush1.bf16.msra.mxu0 %v3589_v35  ;;  %v3718_v34 = vcombine.high %v254_v29, %v262_v30  ;;  %v239_v35 = vld [vmem:[%s5731_s3 + $0x3a0] sm:$0xff] }
  0xf6   :  { %1845 = vmatprep.subr.bf16.mxu1 %v3828_v36  ;;  %1888 = vmatprep.subr.bf16.mxu0 %v3830_v37  ;;  %v247_v36 = vld [vmem:[%s5731_s3 + $0x3e0] sm:$0xff]  ;;  %v240_v37 = vld [vmem:[%s5731_s3 + $0x3a8] sm:$0xff] }
  0xf7   :  { %v3704_v43 = vcombine.high %v239_v35, %v247_v36  ;;  %v3703_v49 = vcombine.low %v239_v35, %v247_v36  ;;  %v3705_v50 = vcombine.low %v240_v37, %v248_v38  ;;  %v136_v35 = vld [vmem:[%s5731_s3 + $0x68] sm:$0xff] }
  0xf9   :  { %1846 = vmatpush2.bf16.msra.mxu1 %v3827_v44  ;;  %1889 = vmatpush2.bf16.msra.mxu0 %v3829_v45  ;;  %v3706_v44 = vcombine.high %v240_v37, %v248_v38  ;;  %v223_v45 = vld [vmem:[%s5731_s3 + $0x320] sm:$0xff] }
  0xfa   :  { %1847 = vmatprep.subr.bf16.mxu1 %v3812_v46  ;;  %1890 = vmatprep.subr.bf16.mxu0 %v3814_v47  ;;  %v231_v46 = vld [vmem:[%s5731_s3 + $0x360] sm:$0xff]  ;;  %v224_v47 = vld [vmem:[%s5731_s3 + $0x328] sm:$0xff] }
  0xfb   :  { %v3688_v51 = vcombine.high %v223_v45, %v231_v46  ;;  %v3687_v57 = vcombine.low %v223_v45, %v231_v46  ;;  %v3689_v58 = vcombine.low %v224_v47, %v232_v48  ;;  %v376_v45 = vld [vmem:[%s5731_s3 + $0x7e8] sm:$0xff] }
  0xfd   :  { %1848 = vmatpush2.bf16.msra.mxu1 %v3811_v52  ;;  %1891 = vmatpush2.bf16.msra.mxu0 %v3813_v53  ;;  %v3690_v52 = vcombine.high %v224_v47, %v232_v48  ;;  %v207_v53 = vld [vmem:[%s5731_s3 + $0x2a0] sm:$0xff] }
  0xfe   :  { %1849 = vmatprep.subr.bf16.mxu1 %v3796_v54  ;;  %1892 = vmatprep.subr.bf16.mxu0 %v3798_v55  ;;  %v215_v54 = vld [vmem:[%s5731_s3 + $0x2e0] sm:$0xff]  ;;  %v208_v55 = vld [vmem:[%s5731_s3 + $0x2a8] sm:$0xff] }
  0xff   :  { %v3672_v59 = vcombine.high %v207_v53, %v215_v54  ;;  %v3671_v1 = vcombine.low %v207_v53, %v215_v54  ;;  %v3673_v2 = vcombine.low %v208_v55, %v216_v56  ;;  %v360_v53 = vld [vmem:[%s5731_s3 + $0x768] sm:$0xff] }
 0x101   :  { %1850 = vmatpush2.bf16.msra.mxu1 %v3795_v60  ;;  %1893 = vmatpush2.bf16.msra.mxu0 %v3797_v61  ;;  %v3674_v60 = vcombine.high %v208_v55, %v216_v56  ;;  %v191_v61 = vld [vmem:[%s5731_s3 + $0x220] sm:$0xff] }
 0x102   :  { %1851 = vmatprep.subr.bf16.mxu1 %v3780_v62  ;;  %1894 = vmatprep.subr.bf16.mxu0 %v3782_v63  ;;  %v199_v62 = vld [vmem:[%s5731_s3 + $0x260] sm:$0xff]  ;;  %v192_v63 = vld [vmem:[%s5731_s3 + $0x228] sm:$0xff] }
 0x103   :  { %v3656_v3 = vcombine.high %v191_v61, %v199_v62  ;;  %v3655_v9 = vcombine.low %v191_v61, %v199_v62  ;;  %v3657_v10 = vcombine.low %v192_v63, %v200_v0  ;;  %v344_v61 = vld [vmem:[%s5731_s3 + $0x6e8] sm:$0xff] }
 0x105   :  { %1852 = vmatpush2.bf16.msra.mxu1 %v3779_v4  ;;  %1895 = vmatpush2.bf16.msra.mxu0 %v3781_v5  ;;  %v3658_v4 = vcombine.high %v192_v63, %v200_v0  ;;  %v175_v5 = vld [vmem:[%s5731_s3 + $0x1a0] sm:$0xff] }
 0x106   :  { %1853 = vmatprep.subr.bf16.mxu1 %v3764_v6  ;;  %1896 = vmatprep.subr.bf16.mxu0 %v3766_v7  ;;  %v183_v6 = vld [vmem:[%s5731_s3 + $0x1e0] sm:$0xff]  ;;  %v176_v7 = vld [vmem:[%s5731_s3 + $0x1a8] sm:$0xff] }
 0x107   :  { %v3640_v11 = vcombine.high %v175_v5, %v183_v6  ;;  %v3639_v20 = vcombine.low %v175_v5, %v183_v6  ;;  %v3641_v21 = vcombine.low %v176_v7, %v184_v8  ;;  %v328_v5 = vld [vmem:[%s5731_s3 + $0x668] sm:$0xff] }
 0x109   :  { %1854 = vmatpush2.bf16.msra.mxu1 %v3763_v12  ;;  %1897 = vmatpush2.bf16.msra.mxu0 %v3765_v13  ;;  %v3642_v12 = vcombine.high %v176_v7, %v184_v8  ;;  %v159_v13 = vld [vmem:[%s5731_s3 + $0x120] sm:$0xff] }
 0x10a   :  { %1855 = vmatprep.subr.bf16.mxu1 %v3748_v14  ;;  %1898 = vmatprep.subr.bf16.mxu0 %v3750_v15  ;;  %v167_v14 = vld [vmem:[%s5731_s3 + $0x160] sm:$0xff]  ;;  %v160_v15 = vld [vmem:[%s5731_s3 + $0x128] sm:$0xff] }
 0x10b   :  { %v3624_v22 = vcombine.high %v159_v13, %v167_v14  ;;  %v3623_v28 = vcombine.low %v159_v13, %v167_v14  ;;  %v3625_v29 = vcombine.low %v160_v15, %v168_v16  ;;  %v312_v13 = vld [vmem:[%s5731_s3 + $0x5e8] sm:$0xff] }
 0x10d   :  { %1856 = vmatpush2.bf16.msra.mxu1 %v3747_v23  ;;  %1899 = vmatpush2.bf16.msra.mxu0 %v3749_v24  ;;  %v3626_v23 = vcombine.high %v160_v15, %v168_v16  ;;  %v143_v24 = vld [vmem:[%s5731_s3 + $0xa0] sm:$0xff] }
 0x10e   :  { %1857 = vmatprep.subr.bf16.mxu1 %v3732_v25  ;;  %1900 = vmatprep.subr.bf16.mxu0 %v3734_v26  ;;  %v151_v25 = vld [vmem:[%s5731_s3 + $0xe0] sm:$0xff]  ;;  %v144_v26 = vld [vmem:[%s5731_s3 + $0xa8] sm:$0xff] }
 0x10f   :  { %v3608_v30 = vcombine.high %v143_v24, %v151_v25  ;;  %v3607_v36 = vcombine.low %v143_v24, %v151_v25  ;;  %v3609_v37 = vcombine.low %v144_v26, %v152_v27  ;;  %v296_v24 = vld [vmem:[%s5731_s3 + $0x568] sm:$0xff] }
 0x111   :  { %1858 = vmatpush2.bf16.msra.mxu1 %v3731_v31  ;;  %1901 = vmatpush2.bf16.msra.mxu0 %v3733_v32  ;;  %v3610_v31 = vcombine.high %v144_v26, %v152_v27  ;;  %v127_v32 = vld [vmem:[%s5731_s3 + $0x20] sm:$0xff] }
 0x112   :  { %1859 = vmatprep.subr.bf16.mxu1 %v3716_v33  ;;  %1902 = vmatprep.subr.bf16.mxu0 %v3718_v34  ;;  %v135_v33 = vld [vmem:[%s5731_s3 + $0x60] sm:$0xff]  ;;  %v128_v34 = vld [vmem:[%s5731_s3 + $0x28] sm:$0xff] }
 0x113   :  { %v3592_v38 = vcombine.high %v127_v32, %v135_v33  ;;  %v3591_v46 = vcombine.low %v127_v32, %v135_v33  ;;  %v3593_v47 = vcombine.low %v128_v34, %v136_v35  ;;  %v280_v32 = vld [vmem:[%s5731_s3 + $0x4e8] sm:$0xff] }
 0x115   :  { %1860 = vmatpush2.bf16.msra.mxu1 %v3715_v41  ;;  %1903 = vmatpush2.bf16.msra.mxu0 %v3717_v42  ;;  %v3594_v41 = vcombine.high %v128_v34, %v136_v35  ;;  %v367_v42 = vld [vmem:[%s5731_s3 + $0x7a0] sm:$0xff] }
 0x116   :  { %1915 = vmatprep.subr.bf16.mxu1 %v3704_v43  ;;  %1958 = vmatprep.subr.bf16.mxu0 %v3706_v44  ;;  %v375_v43 = vld [vmem:[%s5731_s3 + $0x7e0] sm:$0xff]  ;;  %v368_v44 = vld [vmem:[%s5731_s3 + $0x7a8] sm:$0xff] }
 0x117   :  { %v3832_v48 = vcombine.high %v367_v42, %v375_v43  ;;  %v3831_v54 = vcombine.low %v367_v42, %v375_v43  ;;  %v3833_v55 = vcombine.low %v368_v44, %v376_v45  ;;  %v264_v42 = vld [vmem:[%s5731_s3 + $0x468] sm:$0xff] }
 0x118   :  { %1862 = vmatmul.mubr.bf16.vlgmr.msra.gmra.mxu1 %v4606_v40  ;;  %1905 = vmatmul.mubr.bf16.vlgmr.msra.gmra.mxu0 %v4606_v40 }
 0x119   :  { %1916 = vmatpush1.bf16.msra.mxu1 %v3703_v49  ;;  %1947 = vmatprep.mubr.bf16.mxu1 %v4604_v39  ;;  %v3834_v49 = vcombine.high %v368_v44, %v376_v45 }
 0x11a   :  { %1959 = vmatpush1.bf16.msra.mxu0 %v3705_v50  ;;  %1990 = vmatprep.mubr.bf16.mxu0 %v4604_v39  ;;  %v351_v50 = vld [vmem:[%s5731_s3 + $0x720] sm:$0xff] }
 0x11b   :  { %1917 = vmatprep.subr.bf16.mxu1 %v3688_v51  ;;  %1960 = vmatprep.subr.bf16.mxu0 %v3690_v52  ;;  %v359_v51 = vld [vmem:[%s5731_s3 + $0x760] sm:$0xff]  ;;  %v352_v52 = vld [vmem:[%s5731_s3 + $0x728] sm:$0xff] }
 0x11c   :  { %v3816_v56 = vcombine.high %v351_v50, %v359_v51  ;;  %v3815_v62 = vcombine.low %v351_v50, %v359_v51  ;;  %v3817_v63 = vcombine.low %v352_v52, %v360_v53  ;;  %v250_v50 = vld [vmem:[%s5731_s3 + $0x3f8] sm:$0xff] }
 0x11d   :  { %1918 = vmatpush1.bf16.msra.mxu1 %v3687_v57  ;;  %v3818_v57 = vcombine.high %v352_v52, %v360_v53 }
 0x11e   :  { %1961 = vmatpush1.bf16.msra.mxu0 %v3689_v58  ;;  %1919 = vmatprep.subr.bf16.mxu1 %v3672_v59  ;;  %v335_v58 = vld [vmem:[%s5731_s3 + $0x6a0] sm:$0xff] }
 0x11f   :  { %1962 = vmatprep.subr.bf16.mxu0 %v3674_v60  ;;  %v343_v59 = vld [vmem:[%s5731_s3 + $0x6e0] sm:$0xff]  ;;  %v336_v60 = vld [vmem:[%s5731_s3 + $0x6a8] sm:$0xff] }
 0x120   :  { %v3800_v0 = vcombine.high %v335_v58, %v343_v59  ;;  %v3799_v6 = vcombine.low %v335_v58, %v343_v59  ;;  %v3801_v7 = vcombine.low %v336_v60, %v344_v61  ;;  %v226_v58 = vld [vmem:[%s5731_s3 + $0x338] sm:$0xff] }
 0x121   :  { %1920 = vmatpush1.bf16.msra.mxu1 %v3671_v1  ;;  %v3802_v1 = vcombine.high %v336_v60, %v344_v61  ;;  %v234_v59 = vld [vmem:[%s5731_s3 + $0x378] sm:$0xff] }
 0x122   :  { %1963 = vmatpush1.bf16.msra.mxu0 %v3673_v2  ;;  %1921 = vmatprep.subr.bf16.mxu1 %v3656_v3  ;;  %v319_v2 = vld [vmem:[%s5731_s3 + $0x620] sm:$0xff] }
 0x123   :  { %1964 = vmatprep.subr.bf16.mxu0 %v3658_v4  ;;  %v327_v3 = vld [vmem:[%s5731_s3 + $0x660] sm:$0xff]  ;;  %v320_v4 = vld [vmem:[%s5731_s3 + $0x628] sm:$0xff] }
 0x124   :  { %v3784_v8 = vcombine.high %v319_v2, %v327_v3  ;;  %v3783_v14 = vcombine.low %v319_v2, %v327_v3  ;;  %v3785_v15 = vcombine.low %v320_v4, %v328_v5  ;;  %v218_v2 = vld [vmem:[%s5731_s3 + $0x2f8] sm:$0xff] }
 0x125   :  { %1922 = vmatpush1.bf16.msra.mxu1 %v3655_v9  ;;  %v3786_v9 = vcombine.high %v320_v4, %v328_v5  ;;  %v3693_v4 = vcombine.low %v226_v58, %v234_v59 }
 0x126   :  { %1965 = vmatpush1.bf16.msra.mxu0 %v3657_v10  ;;  %1923 = vmatprep.subr.bf16.mxu1 %v3640_v11  ;;  %v303_v10 = vld [vmem:[%s5731_s3 + $0x5a0] sm:$0xff] }
 0x127   :  { %1966 = vmatprep.subr.bf16.mxu0 %v3642_v12  ;;  %v311_v11 = vld [vmem:[%s5731_s3 + $0x5e0] sm:$0xff]  ;;  %v304_v12 = vld [vmem:[%s5731_s3 + $0x5a8] sm:$0xff] }
 0x128   :  { %v3768_v16 = vcombine.high %v303_v10, %v311_v11  ;;  %v3767_v25 = vcombine.low %v303_v10, %v311_v11  ;;  %v3769_v26 = vcombine.low %v304_v12, %v312_v13  ;;  %v202_v10 = vld [vmem:[%s5731_s3 + $0x278] sm:$0xff] }
 0x129   :  { %1924 = vmatpush1.bf16.msra.mxu1 %v3639_v20  ;;  %v3770_v20 = vcombine.high %v304_v12, %v312_v13 }
 0x12a   :  { %1967 = vmatpush1.bf16.msra.mxu0 %v3641_v21  ;;  %1925 = vmatprep.subr.bf16.mxu1 %v3624_v22  ;;  %v287_v21 = vld [vmem:[%s5731_s3 + $0x520] sm:$0xff] }
 0x12b   :  { %1968 = vmatprep.subr.bf16.mxu0 %v3626_v23  ;;  %v295_v22 = vld [vmem:[%s5731_s3 + $0x560] sm:$0xff]  ;;  %v288_v23 = vld [vmem:[%s5731_s3 + $0x528] sm:$0xff] }
 0x12c   :  { %v3752_v27 = vcombine.high %v287_v21, %v295_v22  ;;  %v3751_v33 = vcombine.low %v287_v21, %v295_v22  ;;  %v3753_v34 = vcombine.low %v288_v23, %v296_v24 }
 0x12d   :  { %1926 = vmatpush1.bf16.msra.mxu1 %v3623_v28  ;;  %v3754_v28 = vcombine.high %v288_v23, %v296_v24 }
 0x12e   :  { %1969 = vmatpush1.bf16.msra.mxu0 %v3625_v29  ;;  %1927 = vmatprep.subr.bf16.mxu1 %v3608_v30  ;;  %v271_v29 = vld [vmem:[%s5731_s3 + $0x4a0] sm:$0xff] }
 0x12f   :  { %1970 = vmatprep.subr.bf16.mxu0 %v3610_v31  ;;  %v279_v30 = vld [vmem:[%s5731_s3 + $0x4e0] sm:$0xff]  ;;  %v272_v31 = vld [vmem:[%s5731_s3 + $0x4a8] sm:$0xff] }
 0x130   :  { %v3736_v35 = vcombine.high %v271_v29, %v279_v30  ;;  %v3735_v43 = vcombine.low %v271_v29, %v279_v30  ;;  %v3737_v44 = vcombine.low %v272_v31, %v280_v32 }
 0x131   :  { %1928 = vmatpush1.bf16.msra.mxu1 %v3607_v36  ;;  %v3738_v36 = vcombine.high %v272_v31, %v280_v32 }
 0x132   :  { %1971 = vmatpush1.bf16.msra.mxu0 %v3609_v37  ;;  %1929 = vmatprep.subr.bf16.mxu1 %v3592_v38  ;;  %v255_v37 = vld [vmem:[%s5731_s3 + $0x420] sm:$0xff] }
 0x133   :  { %1972 = vmatprep.subr.bf16.mxu0 %v3594_v41  ;;  %v263_v38 = vld [vmem:[%s5731_s3 + $0x460] sm:$0xff]  ;;  %v256_v41 = vld [vmem:[%s5731_s3 + $0x428] sm:$0xff] }
 0x134   :  { %v3720_v45 = vcombine.high %v255_v37, %v263_v38  ;;  %v3719_v51 = vcombine.low %v255_v37, %v263_v38  ;;  %v3721_v52 = vcombine.low %v256_v41, %v264_v42 }
 0x135   :  { %1930 = vmatpush1.bf16.msra.mxu1 %v3591_v46  ;;  %v3722_v46 = vcombine.high %v256_v41, %v264_v42 }
 0x136   :  { %1973 = vmatpush1.bf16.msra.mxu0 %v3593_v47  ;;  %1931 = vmatprep.subr.bf16.mxu1 %v3832_v48  ;;  %v241_v47 = vld [vmem:[%s5731_s3 + $0x3b0] sm:$0xff] }
 0x137   :  { %1974 = vmatprep.subr.bf16.mxu0 %v3834_v49  ;;  %v249_v48 = vld [vmem:[%s5731_s3 + $0x3f0] sm:$0xff]  ;;  %v242_v49 = vld [vmem:[%s5731_s3 + $0x3b8] sm:$0xff] }
 0x138   :  { %v3708_v53 = vcombine.high %v241_v47, %v249_v48  ;;  %v3709_v60 = vcombine.low %v242_v49, %v250_v50 }
 0x139   :  { %1932 = vmatpush2.bf16.msra.mxu1 %v3831_v54  ;;  %v3710_v54 = vcombine.high %v242_v49, %v250_v50 }
 0x13a   :  { %1975 = vmatpush2.bf16.msra.mxu0 %v3833_v55  ;;  %1933 = vmatprep.subr.bf16.mxu1 %v3816_v56  ;;  %v225_v55 = vld [vmem:[%s5731_s3 + $0x330] sm:$0xff] }
 0x13b   :  { %1976 = vmatprep.subr.bf16.mxu0 %v3818_v57  ;;  %v233_v56 = vld [vmem:[%s5731_s3 + $0x370] sm:$0xff]  ;;  %v3707_v57 = vcombine.low %v241_v47, %v249_v48 }
 0x13c   :  { %v3692_v61 = vcombine.high %v225_v55, %v233_v56  ;;  %v3691_v3 = vcombine.low %v225_v55, %v233_v56 }
 0x13d   :  { %1934 = vmatpush2.bf16.msra.mxu1 %v3815_v62  ;;  %v209_v62 = vld [vmem:[%s5731_s3 + $0x2b0] sm:$0xff] }
 0x13e   :  { %1977 = vmatpush2.bf16.msra.mxu0 %v3817_v63  ;;  %1935 = vmatprep.subr.bf16.mxu1 %v3800_v0  ;;  %v217_v63 = vld [vmem:[%s5731_s3 + $0x2f0] sm:$0xff]  ;;  %v3694_v0 = vcombine.high %v226_v58, %v234_v59 }
 0x13f   :  { %1978 = vmatprep.subr.bf16.mxu0 %v3802_v1  ;;  %v210_v1 = vld [vmem:[%s5731_s3 + $0x2b8] sm:$0xff]  ;;  %v3676_v5 = vcombine.high %v209_v62, %v217_v63  ;;  %v353_v59 = vld [vmem:[%s5731_s3 + $0x730] sm:$0xff] }
 0x140   :  { %v3677_v11 = vcombine.low %v210_v1, %v218_v2 }
 0x141   :  { %1936 = vmatpush2.bf16.msra.mxu1 %v3799_v6  ;;  %v3678_v6 = vcombine.high %v210_v1, %v218_v2 }
 0x142   :  { %1979 = vmatpush2.bf16.msra.mxu0 %v3801_v7  ;;  %1937 = vmatprep.subr.bf16.mxu1 %v3784_v8  ;;  %v193_v7 = vld [vmem:[%s5731_s3 + $0x230] sm:$0xff] }
 0x143   :  { %1980 = vmatprep.subr.bf16.mxu0 %v3786_v9  ;;  %v201_v8 = vld [vmem:[%s5731_s3 + $0x270] sm:$0xff]  ;;  %v194_v9 = vld [vmem:[%s5731_s3 + $0x238] sm:$0xff] }
 0x144   :  { %v3660_v12 = vcombine.high %v193_v7, %v201_v8  ;;  %v3662_v13 = vcombine.high %v194_v9, %v202_v10  ;;  %v3659_v21 = vcombine.low %v193_v7, %v201_v8  ;;  %v3661_v22 = vcombine.low %v194_v9, %v202_v10 }
 0x145   :  { %1938 = vmatpush2.bf16.msra.mxu1 %v3783_v14  ;;  %v177_v14 = vld [vmem:[%s5731_s3 + $0x1b0] sm:$0xff] }
 0x146   :  { %1981 = vmatpush2.bf16.msra.mxu0 %v3785_v15  ;;  %1939 = vmatprep.subr.bf16.mxu1 %v3768_v16  ;;  %v185_v15 = vld [vmem:[%s5731_s3 + $0x1f0] sm:$0xff]  ;;  %v178_v16 = vld [vmem:[%s5731_s3 + $0x1b8] sm:$0xff] }
 0x147   :  { %1982 = vmatprep.subr.bf16.mxu0 %v3770_v20  ;;  %v186_v20 = vld [vmem:[%s5731_s3 + $0x1f8] sm:$0xff]  ;;  %v3644_v23 = vcombine.high %v177_v14, %v185_v15  ;;  %v3643_v29 = vcombine.low %v177_v14, %v185_v15 }
 0x148   :  { %v3646_v24 = vcombine.high %v178_v16, %v186_v20  ;;  %v3645_v30 = vcombine.low %v178_v16, %v186_v20 }
 0x149   :  { %1940 = vmatpush2.bf16.msra.mxu1 %v3767_v25  ;;  %v161_v25 = vld [vmem:[%s5731_s3 + $0x130] sm:$0xff] }
 0x14a   :  { %1983 = vmatpush2.bf16.msra.mxu0 %v3769_v26  ;;  %1941 = vmatprep.subr.bf16.mxu1 %v3752_v27  ;;  %v169_v26 = vld [vmem:[%s5731_s3 + $0x170] sm:$0xff]  ;;  %v162_v27 = vld [vmem:[%s5731_s3 + $0x138] sm:$0xff] }
 0x14b   :  { %1984 = vmatprep.subr.bf16.mxu0 %v3754_v28  ;;  %v170_v28 = vld [vmem:[%s5731_s3 + $0x178] sm:$0xff]  ;;  %v3628_v31 = vcombine.high %v161_v25, %v169_v26  ;;  %v3627_v37 = vcombine.low %v161_v25, %v169_v26 }
 0x14c   :  { %v3630_v32 = vcombine.high %v162_v27, %v170_v28  ;;  %v3629_v38 = vcombine.low %v162_v27, %v170_v28 }
 0x14d   :  { %1942 = vmatpush2.bf16.msra.mxu1 %v3751_v33  ;;  %v145_v33 = vld [vmem:[%s5731_s3 + $0xb0] sm:$0xff] }
 0x14e   :  { %1985 = vmatpush2.bf16.msra.mxu0 %v3753_v34  ;;  %1943 = vmatprep.subr.bf16.mxu1 %v3736_v35  ;;  %v153_v34 = vld [vmem:[%s5731_s3 + $0xf0] sm:$0xff]  ;;  %v146_v35 = vld [vmem:[%s5731_s3 + $0xb8] sm:$0xff] }
 0x14f   :  { %1986 = vmatprep.subr.bf16.mxu0 %v3738_v36  ;;  %v154_v36 = vld [vmem:[%s5731_s3 + $0xf8] sm:$0xff]  ;;  %v3612_v41 = vcombine.high %v145_v33, %v153_v34  ;;  %v3611_v47 = vcombine.low %v145_v33, %v153_v34 }
 0x150   :  { %v3614_v42 = vcombine.high %v146_v35, %v154_v36  ;;  %v3613_v48 = vcombine.low %v146_v35, %v154_v36 }
 0x151   :  { %1944 = vmatpush2.bf16.msra.mxu1 %v3735_v43  ;;  %v129_v43 = vld [vmem:[%s5731_s3 + $0x30] sm:$0xff] }
 0x152   :  { %1987 = vmatpush2.bf16.msra.mxu0 %v3737_v44  ;;  %1945 = vmatprep.subr.bf16.mxu1 %v3720_v45  ;;  %v137_v44 = vld [vmem:[%s5731_s3 + $0x70] sm:$0xff]  ;;  %v130_v45 = vld [vmem:[%s5731_s3 + $0x38] sm:$0xff] }
 0x153   :  { %1988 = vmatprep.subr.bf16.mxu0 %v3722_v46  ;;  %v138_v46 = vld [vmem:[%s5731_s3 + $0x78] sm:$0xff]  ;;  %v3596_v49 = vcombine.high %v129_v43, %v137_v44  ;;  %v3595_v55 = vcombine.low %v129_v43, %v137_v44 }
 0x154   :  { %v3598_v50 = vcombine.high %v130_v45, %v138_v46  ;;  %v3597_v56 = vcombine.low %v130_v45, %v138_v46 }
 0x155   :  { %1946 = vmatpush2.bf16.msra.mxu1 %v3719_v51  ;;  %v369_v51 = vld [vmem:[%s5731_s3 + $0x7b0] sm:$0xff] }
 0x156   :  { %1989 = vmatpush2.bf16.msra.mxu0 %v3721_v52  ;;  %2001 = vmatprep.subr.bf16.mxu1 %v3708_v53  ;;  %v377_v52 = vld [vmem:[%s5731_s3 + $0x7f0] sm:$0xff]  ;;  %v370_v53 = vld [vmem:[%s5731_s3 + $0x7b8] sm:$0xff] }
 0x157   :  { %2044 = vmatprep.subr.bf16.mxu0 %v3710_v54  ;;  %v378_v54 = vld [vmem:[%s5731_s3 + $0x7f8] sm:$0xff] }
 0x158   :  { %1948 = vmatmul.mubr.bf16.vlgmr.msra.gmra.mxu1 %v4606_v40  ;;  %v3838_v58 = vcombine.high %v370_v53, %v378_v54 }
 0x159   :  { %1991 = vmatmul.mubr.bf16.vlgmr.msra.gmra.mxu0 %v4606_v40  ;;  %2002 = vmatpush1.bf16.msra.mxu1 %v3707_v57  ;;  %v3836_v57 = vcombine.high %v369_v51, %v377_v52 }
 0x15a   :  { %2033 = vmatprep.mubr.bf16.mxu1 %v4604_v39  ;;  %2045 = vmatpush1.bf16.msra.mxu0 %v3709_v60  ;;  %v361_v60 = vld [vmem:[%s5731_s3 + $0x770] sm:$0xff] }
 0x15b   :  { %2076 = vmatprep.mubr.bf16.mxu0 %v4604_v39  ;;  %2003 = vmatprep.subr.bf16.mxu1 %v3692_v61  ;;  %v3675_v39 = vcombine.low %v209_v62, %v217_v63  ;;  %v354_v61 = vld [vmem:[%s5731_s3 + $0x738] sm:$0xff]  ;;  %v3835_v63 = vcombine.low %v369_v51, %v377_v52  ;;  %v3820_v1 = vcombine.high %v353_v59, %v361_v60 }
 0x15c   :  { %2046 = vmatprep.subr.bf16.mxu0 %v3694_v0  ;;  %v362_v62 = vld [vmem:[%s5731_s3 + $0x778] sm:$0xff]  ;;  %v3837_v0 = vcombine.low %v370_v53, %v378_v54  ;;  %v3819_v7 = vcombine.low %v353_v59, %v361_v60  ;;  %v397_v59 = vsub.s32 3, %v4579_v17 }
 0x15d   :  { %2004 = vmatpush1.bf16.msra.mxu1 %v3691_v3  ;;  %v3822_v2 = vcombine.high %v354_v61, %v362_v62  ;;  %v337_v3 = vld [vmem:[%s5731_s3 + $0x6b0] sm:$0xff]  ;;  %v3821_v8 = vcombine.low %v354_v61, %v362_v62  ;;  %v4156_v60 = vld [vmem:[%s5733_s5 + $0x38] sm:$0xff]   ;;  %v5187_v61 = vld [vmem:[%s5732_s4] sm:$0xff] }
 0x15e   :  { %2047 = vmatpush1.bf16.msra.mxu0 %v3693_v4  ;;  %2005 = vmatprep.subr.bf16.mxu1 %v3676_v5  ;;  %v345_v4 = vld [vmem:[%s5731_s3 + $0x6f0] sm:$0xff]  ;;  %v338_v5 = vld [vmem:[%s5731_s3 + $0x6b8] sm:$0xff] }
 0x15f   :  { %2048 = vmatprep.subr.bf16.mxu0 %v3678_v6  ;;  %v346_v6 = vld [vmem:[%s5731_s3 + $0x6f8] sm:$0xff]  ;;  %v3804_v9 = vcombine.high %v337_v3, %v345_v4  ;;  %v3803_v14 = vcombine.low %v337_v3, %v345_v4 }
 0x160   :  { %v3806_v10 = vcombine.high %v338_v5, %v346_v6  ;;  %v3805_v15 = vcombine.low %v338_v5, %v346_v6  ;;  %v4157_v62 = vld [vmem:[%s5733_s5 + $0xb8] sm:$0xff]   ;;  %v4160_v5 = vld [vmem:[%s5733_s5 + $0x30] sm:$0xff]  }
 0x161   :  { %2006 = vmatpush1.bf16.msra.mxu1 %v3675_v39  ;;  %v321_v39 = vld [vmem:[%s5731_s3 + $0x630] sm:$0xff] }
 0x162   :  { %2049 = vmatpush1.bf16.msra.mxu0 %v3677_v11  ;;  %2007 = vmatprep.subr.bf16.mxu1 %v3660_v12  ;;  %v329_v11 = vld [vmem:[%s5731_s3 + $0x670] sm:$0xff]  ;;  %v322_v12 = vld [vmem:[%s5731_s3 + $0x638] sm:$0xff] }
 0x163   :  { %2050 = vmatprep.subr.bf16.mxu0 %v3662_v13  ;;  %v330_v13 = vld [vmem:[%s5731_s3 + $0x678] sm:$0xff]  ;;  %v3788_v16 = vcombine.high %v321_v39, %v329_v11  ;;  %v3787_v25 = vcombine.low %v321_v39, %v329_v11 }
 0x164   :  { %v3790_v20 = vcombine.high %v322_v12, %v330_v13  ;;  %v3789_v26 = vcombine.low %v322_v12, %v330_v13  ;;  %v4164_v13 = vld [vmem:[%s5733_s5 + $0x28] sm:$0xff]  }
 0x165   :  { %2008 = vmatpush1.bf16.msra.mxu1 %v3659_v21  ;;  %v305_v21 = vld [vmem:[%s5731_s3 + $0x5b0] sm:$0xff] }
 0x166   :  { %2051 = vmatpush1.bf16.msra.mxu0 %v3661_v22  ;;  %2009 = vmatprep.subr.bf16.mxu1 %v3644_v23  ;;  %v313_v22 = vld [vmem:[%s5731_s3 + $0x5f0] sm:$0xff]  ;;  %v306_v23 = vld [vmem:[%s5731_s3 + $0x5b8] sm:$0xff] }
 0x167   :  { %2052 = vmatprep.subr.bf16.mxu0 %v3646_v24  ;;  %v314_v24 = vld [vmem:[%s5731_s3 + $0x5f8] sm:$0xff]  ;;  %v3772_v27 = vcombine.high %v305_v21, %v313_v22  ;;  %v3771_v33 = vcombine.low %v305_v21, %v313_v22  ;;  %v2120_v22 = vld [vmem:[%s5735_s7 + $0x8] sm:$0xff] }
 0x168   :  { %v3774_v28 = vcombine.high %v306_v23, %v314_v24  ;;  %v3773_v34 = vcombine.low %v306_v23, %v314_v24 }
 0x169   :  { %2010 = vmatpush1.bf16.msra.mxu1 %v3643_v29  ;;  %v289_v29 = vld [vmem:[%s5731_s3 + $0x530] sm:$0xff] }
 0x16a   :  { %2053 = vmatpush1.bf16.msra.mxu0 %v3645_v30  ;;  %2011 = vmatprep.subr.bf16.mxu1 %v3628_v31  ;;  %v297_v30 = vld [vmem:[%s5731_s3 + $0x570] sm:$0xff]  ;;  %v290_v31 = vld [vmem:[%s5731_s3 + $0x538] sm:$0xff] }
 0x16b   :  { %2054 = vmatprep.subr.bf16.mxu0 %v3630_v32  ;;  %v298_v32 = vld [vmem:[%s5731_s3 + $0x578] sm:$0xff]  ;;  %v3756_v35 = vcombine.high %v289_v29, %v297_v30  ;;  %v3755_v43 = vcombine.low %v289_v29, %v297_v30 }
 0x16c   :  { %v3758_v36 = vcombine.high %v290_v31, %v298_v32  ;;  %v3757_v44 = vcombine.low %v290_v31, %v298_v32  ;;  %v2138_v29 = vld [vmem:[%s5735_s7 + $0x98] sm:$0xff]  ;;  %v4168_v32 = vld [vmem:[%s5733_s5 + $0x20] sm:$0xff]  }
 0x16d   :  { %2012 = vmatpush1.bf16.msra.mxu1 %v3627_v37  ;;  %v273_v37 = vld [vmem:[%s5731_s3 + $0x4b0] sm:$0xff] }
 0x16e   :  { %2055 = vmatpush1.bf16.msra.mxu0 %v3629_v38  ;;  %2013 = vmatprep.subr.bf16.mxu1 %v3612_v41  ;;  %v281_v38 = vld [vmem:[%s5731_s3 + $0x4f0] sm:$0xff]  ;;  %v274_v41 = vld [vmem:[%s5731_s3 + $0x4b8] sm:$0xff] }
 0x16f   :  { %2056 = vmatprep.subr.bf16.mxu0 %v3614_v42  ;;  %v282_v42 = vld [vmem:[%s5731_s3 + $0x4f8] sm:$0xff]  ;;  %v3740_v45 = vcombine.high %v273_v37, %v281_v38  ;;  %v3739_v51 = vcombine.low %v273_v37, %v281_v38 }
 0x170   :  { %v3742_v46 = vcombine.high %v274_v41, %v282_v42  ;;  %v3741_v52 = vcombine.low %v274_v41, %v282_v42  ;;  %v4171_v41 = vld [vmem:[%s5733_s5 + $0xd8] sm:$0xff]   ;;  %v393_v42 = vsub.s32 2, %v4579_v17 }
 0x171   :  { %2014 = vmatpush1.bf16.msra.mxu1 %v3611_v47  ;;  %v257_v47 = vld [vmem:[%s5731_s3 + $0x430] sm:$0xff] }
 0x172   :  { %2057 = vmatpush1.bf16.msra.mxu0 %v3613_v48  ;;  %2015 = vmatprep.subr.bf16.mxu1 %v3596_v49  ;;  %v265_v48 = vld [vmem:[%s5731_s3 + $0x470] sm:$0xff]  ;;  %v258_v49 = vld [vmem:[%s5731_s3 + $0x438] sm:$0xff] }
 0x173   :  { %2058 = vmatprep.subr.bf16.mxu0 %v3598_v50  ;;  %v266_v50 = vld [vmem:[%s5731_s3 + $0x478] sm:$0xff]  ;;  %v3724_v53 = vcombine.high %v257_v47, %v265_v48 }
 0x174   :  { %v3726_v54 = vcombine.high %v258_v49, %v266_v50 }
 0x175   :  { %2016 = vmatpush1.bf16.msra.mxu1 %v3595_v55  ;;  %v3723_v55 = vcombine.low %v257_v47, %v265_v48  ;;  %v4174_v47 = vld [vmem:[%s5733_s5 + $0x50] sm:$0xff]  }
 0x176   :  { %2059 = vmatpush1.bf16.msra.mxu0 %v3597_v56  ;;  %2017 = vmatprep.subr.bf16.mxu1 %v3836_v57  ;;  %v3725_v56 = vcombine.low %v258_v49, %v266_v50  ;;  %v4154_v57 = vld [vmem:[%s5733_s5 + $0x78] sm:$0xff]   ;;  %v4175_v48 = vld [vmem:[%s5733_s5 + $0xd0] sm:$0xff]   ;;  %v386_v49 = vrot.slane %v5187_v61, %v4585_v19  ;;  %v394_v50 = vrot.slane %v5187_v61, %v393_v42 }
 0x177   :  { %2060 = vmatprep.subr.bf16.mxu0 %v3838_v58  ;;  %v4155_v58 = vld [vmem:[%s5733_s5 + $0xf8] sm:$0xff]  }
 0x179   :  { %2018 = vmatpush2.bf16.msra.mxu1 %v3835_v63  ;;  %v4158_v63 = vld [vmem:[%s5733_s5 + $0x70] sm:$0xff]  }
 0x17a   :  { %2061 = vmatpush2.bf16.msra.mxu0 %v3837_v0  ;;  %2019 = vmatprep.subr.bf16.mxu1 %v3820_v1  ;;  %v390_v0 = vrot.slane %v5187_v61, %v4582_v18  ;;  %v398_v1 = vrot.slane %v5187_v61, %v397_v59 }
 0x17b   :  { %2062 = vmatprep.subr.bf16.mxu0 %v3822_v2  ;;  %v4159_v2 = vld [vmem:[%s5733_s5 + $0xf0] sm:$0xff]  }
 0x17d   :  { %2020 = vmatpush2.bf16.msra.mxu1 %v3819_v7 }
 0x17e   :  { %2063 = vmatpush2.bf16.msra.mxu0 %v3821_v8  ;;  %2021 = vmatprep.subr.bf16.mxu1 %v3804_v9  ;;  %v4161_v8 = vld [vmem:[%s5733_s5 + $0xb0] sm:$0xff]   ;;  %v4162_v9 = vld [vmem:[%s5733_s5 + $0x68] sm:$0xff]  }
 0x17f   :  { %2064 = vmatprep.subr.bf16.mxu0 %v3806_v10 }
 0x181   :  { %2022 = vmatpush2.bf16.msra.mxu1 %v3803_v14 }
 0x182   :  { %2065 = vmatpush2.bf16.msra.mxu0 %v3805_v15  ;;  %2023 = vmatprep.subr.bf16.mxu1 %v3788_v16  ;;  %v4165_v16 = vld [vmem:[%s5733_s5 + $0xa8] sm:$0xff]  }
 0x183   :  { %2066 = vmatprep.subr.bf16.mxu0 %v3790_v20  ;;  %v4166_v20 = vld [vmem:[%s5733_s5 + $0x60] sm:$0xff]  }
 0x185   :  { %2024 = vmatpush2.bf16.msra.mxu1 %v3787_v25 }
 0x186   :  { %2067 = vmatpush2.bf16.msra.mxu0 %v3789_v26  ;;  %2025 = vmatprep.subr.bf16.mxu1 %v3772_v27  ;;  %v4167_v26 = vld [vmem:[%s5733_s5 + $0xe0] sm:$0xff]   ;;  %v2122_v27 = vld [vmem:[%s5735_s7 + $0x18] sm:$0xff] }
 0x187   :  { %2068 = vmatprep.subr.bf16.mxu0 %v3774_v28  ;;  %v2136_v28 = vld [vmem:[%s5735_s7 + $0x88] sm:$0xff] }
 0x189   :  { %2026 = vmatpush2.bf16.msra.mxu1 %v3771_v33  ;;  %v4169_v33 = vld [vmem:[%s5733_s5 + $0xa0] sm:$0xff]  }
 0x18a   :  { %2069 = vmatpush2.bf16.msra.mxu0 %v3773_v34  ;;  %2027 = vmatprep.subr.bf16.mxu1 %v3756_v35  ;;  %v4170_v34 = vld [vmem:[%s5733_s5 + $0x58] sm:$0xff]  }
 0x18b   :  { %2070 = vmatprep.subr.bf16.mxu0 %v3758_v36 }
 0x18d   :  { %2028 = vmatpush2.bf16.msra.mxu1 %v3755_v43 }
 0x18e   :  { %2071 = vmatpush2.bf16.msra.mxu0 %v3757_v44  ;;  %2029 = vmatprep.subr.bf16.mxu1 %v3740_v45  ;;  %v4172_v45 = vld [vmem:[%s5733_s5 + $0x18] sm:$0xff]  }
 0x18f   :  { %2072 = vmatprep.subr.bf16.mxu0 %v3742_v46  ;;  %v4173_v46 = vld [vmem:[%s5733_s5 + $0x98] sm:$0xff]  }
 0x191   :  { %2030 = vmatpush2.bf16.msra.mxu1 %v3739_v51  ;;  %v4176_v51 = vld [vmem:[%s5733_s5 + $0x10] sm:$0xff]  }
 0x192   :  { %2073 = vmatpush2.bf16.msra.mxu0 %v3741_v52  ;;  %2031 = vmatprep.subr.bf16.mxu1 %v3724_v53  ;;  %v4177_v53 = vld [vmem:[%s5733_s5 + $0x90] sm:$0xff]  }
 0x193   :  { %2074 = vmatprep.subr.bf16.mxu0 %v3726_v54  ;;  %v4178_v54 = vld [vmem:[%s5733_s5 + $0x48] sm:$0xff]  }
 0x195   :  { %2032 = vmatpush2.bf16.msra.mxu1 %v3723_v55 }
 0x196   :  { %2075 = vmatpush2.bf16.msra.mxu0 %v3725_v56  ;;  %3968 = vmatprep.subr.bf16.mxu1 %v4154_v57  ;;  %v4179_v56 = vld [vmem:[%s5733_s5 + $0xc8] sm:$0xff]  }
 0x197   :  { %3990 = vmatprep.subr.bf16.mxu0 %v4155_v58 }
 0x198   :  { %2034 = vmatmul.mubr.bf16.vlgmr.msra.gmra.mxu1 %v4606_v40  ;;  %v5204_v3 = vpop.f32.mrf.mxu1  ;;  %v5206_v4 = vpop.f32.mrf.mxu0 }
 0x199   :  { %2077 = vmatmul.mubr.bf16.vlgmr.msra.gmra.mxu0 %v4606_v40  ;;  %3969 = vmatpush3.bf16.msra.mxu1 %v4156_v60  ;;  %v4163_v40 = vld [vmem:[%s5733_s5 + $0xe8] sm:$0xff]   ;;  %v1778_v57 = vadd.f32 %v5204_v3, %v386_v49  ;;  %v1821_v58 = vadd.f32 %v5206_v4, %v394_v50  ;;  %v4183_v3 = vld [vmem:[%s5733_s5 + $0xc0] sm:$0xff]  }
 0x19a   :  { %3991 = vmatpush3.bf16.msra.mxu0 %v4157_v62  ;;  %v1779_v6 = vpop.f32.mrf.mxu1  ;;  %v1822_v7 = vpop.f32.mrf.mxu0  ;;  %3970 = vmatprep.subr.bf16.mxu1 %v4158_v63  ;;  %v4180_v60 = vld [vmem:[%s5733_s5 + $0x8] sm:$0xff]  }
 0x19b   :  { %v1780_v10 = vadd.f32 %v1779_v6, %v390_v0  ;;  %v1823_v39 = vadd.f32 %v1822_v7, %v398_v1  ;;  %3992 = vmatprep.subr.bf16.mxu0 %v4159_v2  ;;  %v4181_v63 = vld [vmem:[%s5733_s5 + $0x88] sm:$0xff]   ;;  %v2087_v4 = vmax.f32 %v1778_v57, 0.0  ;;  %v2119_v6 = vld [vmem:[%s5735_s7] sm:$0xff]  ;;  %v2089_v7 = vmax.f32 %v1821_v58, 0.0 }
 0x19c   :  { %v1781_v11 = vpop.f32.mrf.mxu1  ;;  %v1824_v12 = vpop.f32.mrf.mxu0  ;;  %v401_v57 = vsub.s32 4, %v4579_v17  ;;  %v409_v58 = vsub.s32 6, %v4579_v17 }
 0x19d   :  { %3971 = vmatpush3.bf16.msra.mxu1 %v4160_v5  ;;  %v2088_v21 = vmax.f32 %v1780_v10, 0.0  ;;  %v2090_v23 = vmax.f32 %v1823_v39, 0.0  ;;  %v1782_v52 = vadd.f32 %v1781_v11, %v386_v49  ;;  %v1825_v55 = vadd.f32 %v1824_v12, %v394_v50  ;;  %v2137_v5 = vld [vmem:[%s5735_s7 + $0x90] sm:$0xff]  ;;  %v4185_v39 = vld [vmem:[%s5733_s5 + $0x80] sm:$0xff]   ;;  %v4187_v12 = vld [vmem:[%s5733_s5 + $0x1f8] sm:$0xff]  }
 0x19e   :  { %3993 = vmatpush3.bf16.msra.mxu0 %v4161_v8  ;;  %v1783_v14 = vpop.f32.mrf.mxu1  ;;  %v1826_v15 = vpop.f32.mrf.mxu0  ;;  %3972 = vmatprep.subr.bf16.mxu1 %v4162_v9  ;;  %v4184_v8 = vld [vmem:[%s5733_s5] sm:$0xff]   ;;  %v2121_v9 = vld [vmem:[%s5735_s7 + $0x10] sm:$0xff] }
 0x19f   :  { %v1784_v24 = vadd.f32 %v1783_v14, %v390_v0  ;;  %v1827_v25 = vadd.f32 %v1826_v15, %v398_v1  ;;  %3994 = vmatprep.subr.bf16.mxu0 %v4163_v40  ;;  %v2152_v35 = vmul.f32 %v2120_v22, %v2088_v21  ;;  %v2154_v36 = vmul.f32 %v2122_v27, %v2090_v23  ;;  %v4182_v0 = vld [vmem:[%s5733_s5 + $0x40] sm:$0xff]   ;;  %v4186_v40 = vld [vmem:[%s5733_s5 + $0x178] sm:$0xff]   ;;  %v4190_v21 = vld [vmem:[%s5733_s5 + $0x170] sm:$0xff]  }
 0x1a0   :  { %v2103_v62 = vmax.f32 %v1782_v52, 0.0  ;;  %v2135_v1 = vld [vmem:[%s5735_s7 + $0x80] sm:$0xff]  ;;  %v2105_v2 = vmax.f32 %v1825_v55, 0.0  ;;  %v2153_v14 = vmul.f32 %v2121_v9, %v2089_v7  ;;  %v4188_v15 = vld [vmem:[%s5733_s5 + $0x138] sm:$0xff]   ;;  %v4191_v23 = vld [vmem:[%s5733_s5 + $0x1f0] sm:$0xff]   ;;  %v413_v55 = vsub.s32 7, %v4579_v17 }
 0x1a1   :  { %v2104_v30 = vmax.f32 %v1784_v24, 0.0  ;;  %v2106_v31 = vmax.f32 %v1827_v25, 0.0  ;;  %3973 = vmatpush3.bf16.msra.mxu1 %v4164_v13  ;;  %v2151_v13 = vmul.f32 %v2119_v6, %v2087_v4  ;;  %v4192_v24 = vld [vmem:[%s5733_s5 + $0x130] sm:$0xff]   ;;  %v4195_v27 = vld [vmem:[%s5733_s5 + $0x1e8] sm:$0xff]   ;;  %v4214_v49 = vld [vmem:[%s5733_s5 + $0x140] sm:$0xff]  }
 0x1a2   :  { %3995 = vmatpush3.bf16.msra.mxu0 %v4165_v16  ;;  %3974 = vmatprep.subr.bf16.mxu1 %v4166_v20  ;;  %v2167_v10 = vmul.f32 %v2135_v1, %v2103_v62  ;;  %v2169_v11 = vmul.f32 %v2137_v5, %v2105_v2  ;;  %v4189_v20 = vld [vmem:[%s5733_s5 + $0x1b8] sm:$0xff]   ;;  %v4193_v25 = vld [vmem:[%s5733_s5 + $0x1b0] sm:$0xff]   ;;  %v4215_v50 = vld [vmem:[%s5733_s5 + $0x1c0] sm:$0xff]   ;;  %v414_v62 = vrot.slane %v5187_v61, %v413_v55 }
 0x1a3   :  { %v2168_v37 = vmul.f32 %v2136_v28, %v2104_v30  ;;  %v2170_v38 = vmul.f32 %v2138_v29, %v2106_v31  ;;  %3996 = vmatprep.subr.bf16.mxu0 %v4167_v26  ;;  %v4194_v26 = vld [vmem:[%s5733_s5 + $0x168] sm:$0xff]   ;;  %v4198_v30 = vld [vmem:[%s5733_s5 + $0x160] sm:$0xff]   ;;  %v410_v1 = vrot.slane %v5187_v61, %v409_v58 }
 0x1a4   :  { %v2183_v16 = vpack.c.bf16 %v2167_v10, %v2151_v13  ;;  %v2185_v22 = vpack.c.bf16 %v2169_v11, %v2153_v14  ;;  %v4196_v28 = vld [vmem:[%s5733_s5 + $0x128] sm:$0xff]   ;;  %v4199_v31 = vld [vmem:[%s5733_s5 + $0x1e0] sm:$0xff]  }
 0x1a5   :  { %3975 = vmatpush3.bf16.msra.mxu1 %v4168_v32  ;;  %v2184_v43 = vpack.c.bf16 %v2168_v37, %v2152_v35  ;;  %v2186_v44 = vpack.c.bf16 %v2170_v38, %v2154_v36  ;;  %v4197_v29 = vld [vmem:[%s5733_s5 + $0x1a8] sm:$0xff]   ;;  %v4200_v32 = vld [vmem:[%s5733_s5 + $0x120] sm:$0xff]   ;;  %v4203_v35 = vld [vmem:[%s5733_s5 + $0x1d8] sm:$0xff]  }
 0x1a6   :  { %3997 = vmatpush3.bf16.msra.mxu0 %v4169_v33  ;;  %3976 = vmatprep.subr.bf16.mxu1 %v4170_v34  ;;  %v4201_v33 = vld [vmem:[%s5733_s5 + $0x1a0] sm:$0xff]   ;;  %v4202_v34 = vld [vmem:[%s5733_s5 + $0x158] sm:$0xff]   ;;  %v4206_v38 = vld [vmem:[%s5733_s5 + $0x150] sm:$0xff]  }
 0x1a7   :  { %3262 = vmatprep.mubr.bf16.mxu1 %v2184_v43  ;;  %3998 = vmatprep.subr.bf16.mxu0 %v4171_v41  ;;  %v4204_v36 = vld [vmem:[%s5733_s5 + $0x118] sm:$0xff]   ;;  %v4207_v41 = vld [vmem:[%s5733_s5 + $0x1d0] sm:$0xff]   ;;  %v4217_v52 = vld [vmem:[%s5733_s5 + $0x180] sm:$0xff]  }
 0x1a8   :  { %3303 = vmatprep.mubr.bf16.mxu0 %v2186_v44  ;;  %v4205_v37 = vld [vmem:[%s5733_s5 + $0x198] sm:$0xff]   ;;  %v4208_v43 = vld [vmem:[%s5733_s5 + $0x110] sm:$0xff]  }
 0x1a9   :  { %3977 = vmatpush3.bf16.msra.mxu1 %v4172_v45  ;;  %v4209_v44 = vld [vmem:[%s5733_s5 + $0x190] sm:$0xff]   ;;  %v4210_v45 = vld [vmem:[%s5733_s5 + $0x148] sm:$0xff]  }
 0x1aa   :  { %3999 = vmatpush3.bf16.msra.mxu0 %v4173_v46  ;;  %3978 = vmatprep.subr.bf16.mxu1 %v4174_v47  ;;  %v4211_v46 = vld [vmem:[%s5733_s5 + $0x1c8] sm:$0xff]  }
 0x1ab   :  { %4000 = vmatprep.subr.bf16.mxu0 %v4175_v48  ;;  %v4212_v47 = vld [vmem:[%s5733_s5 + $0x108] sm:$0xff]  }
 0x1ac   :  { %v4213_v48 = vld [vmem:[%s5733_s5 + $0x188] sm:$0xff]  }
 0x1ad   :  { %3979 = vmatpush3.bf16.msra.mxu1 %v4176_v51  ;;  %v4216_v51 = vld [vmem:[%s5733_s5 + $0x100] sm:$0xff]  }
 0x1ae   :  { %4001 = vmatpush3.bf16.msra.mxu0 %v4177_v53  ;;  %3980 = vmatprep.subr.bf16.mxu1 %v4178_v54  ;;  %v4218_v53 = vld [vmem:[%s5733_s5 + $0x278] sm:$0xff]   ;;  %v405_v54 = vsub.s32 5, %v4579_v17  ;;  %v2147_v17 = vld [vmem:[%s5735_s7 + $0xe0] sm:$0xff] }
 0x1af   :  { %4002 = vmatprep.subr.bf16.mxu0 %v4179_v56  ;;  %v4219_v56 = vld [vmem:[%s5733_s5 + $0x2f8] sm:$0xff]  }
 0x1b1   :  { %3981 = vmatpush3.bf16.msra.mxu1 %v4180_v60  ;;  %v406_v60 = vrot.slane %v5187_v61, %v405_v54 }
 0x1b2   :  { %4003 = vmatpush3.bf16.msra.mxu0 %v4181_v63  ;;  %3982 = vmatprep.subr.bf16.mxu1 %v4182_v0  ;;  %v402_v63 = vrot.slane %v5187_v61, %v401_v57  ;;  %v2126_v61 = vld [vmem:[%s5735_s7 + $0x38] sm:$0xff] }
 0x1b3   :  { %4004 = vmatprep.subr.bf16.mxu0 %v4183_v3 }
 0x1b5   :  { %3983 = vmatpush3.bf16.msra.mxu1 %v4184_v8 }
 0x1b6   :  { %4005 = vmatpush3.bf16.msra.mxu0 %v4185_v39  ;;  %4012 = vmatprep.subr.bf16.mxu1 %v4186_v40  ;;  %v2124_v39 = vld [vmem:[%s5735_s7 + $0x28] sm:$0xff] }
 0x1b7   :  { %4034 = vmatprep.subr.bf16.mxu0 %v4187_v12 }
 0x1b8   :  { %3263 = vmatmul.mubr.bf16.vlgmr.msra.gmra.mxu1 %v2183_v16  ;;  %v2139_v16 = vld [vmem:[%s5735_s7 + $0xa0] sm:$0xff] }
 0x1b9   :  { %3304 = vmatmul.mubr.bf16.vlgmr.msra.gmra.mxu0 %v2185_v22  ;;  %4013 = vmatpush3.bf16.msra.mxu1 %v4188_v15 }
 0x1ba   :  { %4035 = vmatpush3.bf16.msra.mxu0 %v4189_v20  ;;  %4014 = vmatprep.subr.bf16.mxu1 %v4190_v21  ;;  %v2141_v20 = vld [vmem:[%s5735_s7 + $0xb0] sm:$0xff] }
 0x1bb   :  { %4036 = vmatprep.subr.bf16.mxu0 %v4191_v23 }
 0x1bd   :  { %4015 = vmatpush3.bf16.msra.mxu1 %v4192_v24 }
 0x1be   :  { %4037 = vmatpush3.bf16.msra.mxu0 %v4193_v25  ;;  %4016 = vmatprep.subr.bf16.mxu1 %v4194_v26 }
 0x1bf   :  { %4038 = vmatprep.subr.bf16.mxu0 %v4195_v27  ;;  %v2140_v27 = vld [vmem:[%s5735_s7 + $0xa8] sm:$0xff] }
 0x1c1   :  { %4017 = vmatpush3.bf16.msra.mxu1 %v4196_v28  ;;  %v2142_v28 = vld [vmem:[%s5735_s7 + $0xb8] sm:$0xff] }
 0x1c2   :  { %4039 = vmatpush3.bf16.msra.mxu0 %v4197_v29  ;;  %4018 = vmatprep.subr.bf16.mxu1 %v4198_v30  ;;  %v2123_v29 = vld [vmem:[%s5735_s7 + $0x20] sm:$0xff]  ;;  %v2125_v30 = vld [vmem:[%s5735_s7 + $0x30] sm:$0xff] }
 0x1c3   :  { %4040 = vmatprep.subr.bf16.mxu0 %v4199_v31 }
 0x1c5   :  { %4019 = vmatpush3.bf16.msra.mxu1 %v4200_v32 }
 0x1c6   :  { %4041 = vmatpush3.bf16.msra.mxu0 %v4201_v33  ;;  %4020 = vmatprep.subr.bf16.mxu1 %v4202_v34 }
 0x1c7   :  { %4042 = vmatprep.subr.bf16.mxu0 %v4203_v35 }
 0x1c9   :  { %4021 = vmatpush3.bf16.msra.mxu1 %v4204_v36 }
 0x1ca   :  { %4043 = vmatpush3.bf16.msra.mxu0 %v4205_v37  ;;  %4022 = vmatprep.subr.bf16.mxu1 %v4206_v38 }
 0x1cb   :  { %4044 = vmatprep.subr.bf16.mxu0 %v4207_v41 }
 0x1cd   :  { %4023 = vmatpush3.bf16.msra.mxu1 %v4208_v43 }
 0x1ce   :  { %4045 = vmatpush3.bf16.msra.mxu0 %v4209_v44  ;;  %4024 = vmatprep.subr.bf16.mxu1 %v4210_v45 }
 0x1cf   :  { %4046 = vmatprep.subr.bf16.mxu0 %v4211_v46  ;;  %v4220_v46 = vld [vmem:[%s5733_s5 + $0x238] sm:$0xff]  }
 0x1d1   :  { %4025 = vmatpush3.bf16.msra.mxu1 %v4212_v47  ;;  %v4221_v47 = vld [vmem:[%s5733_s5 + $0x2b8] sm:$0xff]  }
 0x1d2   :  { %4047 = vmatpush3.bf16.msra.mxu0 %v4213_v48  ;;  %4026 = vmatprep.subr.bf16.mxu1 %v4214_v49 }
 0x1d3   :  { %4048 = vmatprep.subr.bf16.mxu0 %v4215_v50  ;;  %v4222_v50 = vld [vmem:[%s5733_s5 + $0x270] sm:$0xff]  }
 0x1d5   :  { %4027 = vmatpush3.bf16.msra.mxu1 %v4216_v51  ;;  %v4223_v51 = vld [vmem:[%s5733_s5 + $0x2f0] sm:$0xff]  }
 0x1d6   :  { %4049 = vmatpush3.bf16.msra.mxu0 %v4217_v52  ;;  %4056 = vmatprep.subr.bf16.mxu1 %v4218_v53  ;;  %v4224_v52 = vld [vmem:[%s5733_s5 + $0x230] sm:$0xff]  }
 0x1d7   :  { %4078 = vmatprep.subr.bf16.mxu0 %v4219_v56  ;;  %v4225_v53 = vld [vmem:[%s5733_s5 + $0x2b0] sm:$0xff]   ;;  %v4226_v56 = vld [vmem:[%s5733_s5 + $0x268] sm:$0xff]  }
 0x1d8   :  { %v1863_v0 = vpop.f32.mrf.mxu1  ;;  %v1906_v2 = vpop.f32.mrf.mxu0 }
 0x1d9   :  { %v1864_v7 = vadd.f32 %v1863_v0, %v402_v63  ;;  %v1907_v8 = vadd.f32 %v1906_v2, %v410_v1  ;;  %v4230_v0 = vld [vmem:[%s5733_s5 + $0x260] sm:$0xff]  }
 0x1da   :  { %v1865_v3 = vpop.f32.mrf.mxu1  ;;  %v1908_v4 = vpop.f32.mrf.mxu0  ;;  %v4232_v2 = vld [vmem:[%s5733_s5 + $0x220] sm:$0xff]  }
 0x1db   :  { %v1866_v5 = vadd.f32 %v1865_v3, %v406_v60  ;;  %v1909_v6 = vadd.f32 %v1908_v4, %v414_v62  ;;  %v2091_v23 = vmax.f32 %v1864_v7, 0.0  ;;  %v2093_v24 = vmax.f32 %v1907_v8, 0.0  ;;  %v4233_v3 = vld [vmem:[%s5733_s5 + $0x2a0] sm:$0xff]   ;;  %v4234_v4 = vld [vmem:[%s5733_s5 + $0x258] sm:$0xff]   ;;  %v4238_v8 = vld [vmem:[%s5733_s5 + $0x250] sm:$0xff]  }
 0x1dc   :  { %v1867_v9 = vpop.f32.mrf.mxu1  ;;  %v1910_v10 = vpop.f32.mrf.mxu0  ;;  %v4237_v7 = vld [vmem:[%s5733_s5 + $0x298] sm:$0xff]  }
 0x1dd   :  { %v1868_v40 = vadd.f32 %v1867_v9, %v402_v63  ;;  %v1911_v11 = vadd.f32 %v1910_v10, %v410_v1  ;;  %v2092_v14 = vmax.f32 %v1866_v5, 0.0  ;;  %v2094_v15 = vmax.f32 %v1909_v6, 0.0  ;;  %v4229_v63 = vld [vmem:[%s5733_s5 + $0x2a8] sm:$0xff]   ;;  %v4231_v1 = vld [vmem:[%s5733_s5 + $0x2e0] sm:$0xff]   ;;  %v4235_v5 = vld [vmem:[%s5733_s5 + $0x2d8] sm:$0xff]  }
 0x1de   :  { %v1869_v12 = vpop.f32.mrf.mxu1  ;;  %v1912_v13 = vpop.f32.mrf.mxu0  ;;  %v2155_v41 = vmul.f32 %v2123_v29, %v2091_v23  ;;  %v2157_v43 = vmul.f32 %v2125_v30, %v2093_v24  ;;  %v4236_v6 = vld [vmem:[%s5733_s5 + $0x218] sm:$0xff]   ;;  %v4239_v9 = vld [vmem:[%s5733_s5 + $0x2d0] sm:$0xff]  }
 0x1df   :  { %v1870_v21 = vadd.f32 %v1869_v12, %v406_v60  ;;  %v1913_v22 = vadd.f32 %v1912_v13, %v414_v62  ;;  %v2107_v25 = vmax.f32 %v1868_v40, 0.0  ;;  %v2109_v26 = vmax.f32 %v1911_v11, 0.0  ;;  %v4227_v60 = vld [vmem:[%s5733_s5 + $0x2e8] sm:$0xff]   ;;  %v4240_v10 = vld [vmem:[%s5733_s5 + $0x210] sm:$0xff]  }
 0x1e0   :  { %v2156_v35 = vmul.f32 %v2124_v39, %v2092_v14  ;;  %v2158_v36 = vmul.f32 %v2126_v61, %v2094_v15  ;;  %v4228_v62 = vld [vmem:[%s5733_s5 + $0x228] sm:$0xff]   ;;  %v4241_v39 = vld [vmem:[%s5733_s5 + $0x290] sm:$0xff]   ;;  %v4246_v14 = vld [vmem:[%s5733_s5 + $0x240] sm:$0xff]  }
 0x1e1   :  { %v2108_v31 = vmax.f32 %v1870_v21, 0.0  ;;  %v2110_v32 = vmax.f32 %v1913_v22, 0.0  ;;  %v2171_v33 = vmul.f32 %v2139_v16, %v2107_v25  ;;  %v2173_v34 = vmul.f32 %v2141_v20, %v2109_v26  ;;  %v4242_v40 = vld [vmem:[%s5733_s5 + $0x248] sm:$0xff]   ;;  %v4247_v15 = vld [vmem:[%s5733_s5 + $0x2c0] sm:$0xff]   ;;  %v4250_v20 = vld [vmem:[%s5733_s5 + $0x378] sm:$0xff]  }
 0x1e2   :  { %v4243_v11 = vld [vmem:[%s5733_s5 + $0x2c8] sm:$0xff]   ;;  %v4248_v61 = vld [vmem:[%s5733_s5 + $0x200] sm:$0xff]   ;;  %v4251_v21 = vld [vmem:[%s5733_s5 + $0x3f8] sm:$0xff]  }
 0x1e3   :  { %v2172_v37 = vmul.f32 %v2140_v27, %v2108_v31  ;;  %v2174_v38 = vmul.f32 %v2142_v28, %v2110_v32  ;;  %v2187_v48 = vpack.c.bf16 %v2171_v33, %v2155_v41  ;;  %v2189_v49 = vpack.c.bf16 %v2173_v34, %v2157_v43  ;;  %v4244_v12 = vld [vmem:[%s5733_s5 + $0x208] sm:$0xff]   ;;  %v4249_v16 = vld [vmem:[%s5733_s5 + $0x280] sm:$0xff]  }
 0x1e4   :  { %v4245_v13 = vld [vmem:[%s5733_s5 + $0x288] sm:$0xff]  }
 0x1e5   :  { %v2188_v44 = vpack.c.bf16 %v2172_v37, %v2156_v35  ;;  %v2190_v45 = vpack.c.bf16 %v2174_v38, %v2158_v36  ;;  %v5560_v22 = vld [vmem:[%s5732_s4 + $0x8] sm:$0xff] }
 0x1e6   :  { %v422_v23 = vrot.slane %v5560_v22, %v4582_v18  ;;  %v418_v24 = vrot.slane %v5560_v22, %v4585_v19  ;;  %v430_v26 = vrot.slane %v5560_v22, %v397_v59  ;;  %v426_v27 = vrot.slane %v5560_v22, %v393_v42  ;;  %v2143_v59 = vld [vmem:[%s5735_s7 + $0xc0] sm:$0xff] }
 0x1e7   :  { %3344 = vmatprep.mubr.bf16.mxu1 %v2188_v44  ;;  %3385 = vmatprep.mubr.bf16.mxu0 %v2190_v45  ;;  %v2128_v45 = vld [vmem:[%s5735_s7 + $0x48] sm:$0xff] }
 0x1e8   :  { %3345 = vmatmul.mubr.bf16.vlgmr.msra.gmra.mxu1 %v2187_v48  ;;  %3386 = vmatmul.mubr.bf16.vlgmr.msra.gmra.mxu0 %v2189_v49  ;;  %v2145_v48 = vld [vmem:[%s5735_s7 + $0xd0] sm:$0xff]  ;;  %v2144_v49 = vld [vmem:[%s5735_s7 + $0xc8] sm:$0xff] }
 0x1e9   :  { %4057 = vmatpush3.bf16.msra.mxu1 %v4220_v46  ;;  %4079 = vmatpush3.bf16.msra.mxu0 %v4221_v47 }
 0x1ea   :  { %4058 = vmatprep.subr.bf16.mxu1 %v4222_v50  ;;  %4080 = vmatprep.subr.bf16.mxu0 %v4223_v51  ;;  %v2127_v51 = vld [vmem:[%s5735_s7 + $0x40] sm:$0xff] }
 0x1ed   :  { %4059 = vmatpush3.bf16.msra.mxu1 %v4224_v52  ;;  %4081 = vmatpush3.bf16.msra.mxu0 %v4225_v53  ;;  %v2130_v53 = vld [vmem:[%s5735_s7 + $0x58] sm:$0xff] }
 0x1ee   :  { %4060 = vmatprep.subr.bf16.mxu1 %v4226_v56  ;;  %4082 = vmatprep.subr.bf16.mxu0 %v4227_v60  ;;  %v2146_v60 = vld [vmem:[%s5735_s7 + $0xd8] sm:$0xff] }
 0x1f1   :  { %4061 = vmatpush3.bf16.msra.mxu1 %v4228_v62  ;;  %4083 = vmatpush3.bf16.msra.mxu0 %v4229_v63  ;;  %v2129_v62 = vld [vmem:[%s5735_s7 + $0x50] sm:$0xff] }
 0x1f2   :  { %4062 = vmatprep.subr.bf16.mxu1 %v4230_v0  ;;  %4084 = vmatprep.subr.bf16.mxu0 %v4231_v1 }
 0x1f5   :  { %4063 = vmatpush3.bf16.msra.mxu1 %v4232_v2  ;;  %4085 = vmatpush3.bf16.msra.mxu0 %v4233_v3 }
 0x1f6   :  { %4064 = vmatprep.subr.bf16.mxu1 %v4234_v4  ;;  %4086 = vmatprep.subr.bf16.mxu0 %v4235_v5 }
 0x1f9   :  { %4065 = vmatpush3.bf16.msra.mxu1 %v4236_v6  ;;  %4087 = vmatpush3.bf16.msra.mxu0 %v4237_v7 }
 0x1fa   :  { %4066 = vmatprep.subr.bf16.mxu1 %v4238_v8  ;;  %4088 = vmatprep.subr.bf16.mxu0 %v4239_v9  ;;  %v4252_v9 = vld [vmem:[%s5733_s5 + $0x338] sm:$0xff]  }
 0x1fd   :  { %4067 = vmatpush3.bf16.msra.mxu1 %v4240_v10  ;;  %4089 = vmatpush3.bf16.msra.mxu0 %v4241_v39 }
 0x1fe   :  { %4068 = vmatprep.subr.bf16.mxu1 %v4242_v40  ;;  %4090 = vmatprep.subr.bf16.mxu0 %v4243_v11  ;;  %v4253_v40 = vld [vmem:[%s5733_s5 + $0x3b8] sm:$0xff]   ;;  %v4254_v11 = vld [vmem:[%s5733_s5 + $0x370] sm:$0xff]  }
 0x201   :  { %4069 = vmatpush3.bf16.msra.mxu1 %v4244_v12  ;;  %4091 = vmatpush3.bf16.msra.mxu0 %v4245_v13  ;;  %v4255_v13 = vld [vmem:[%s5733_s5 + $0x3f0] sm:$0xff]  }
 0x202   :  { %4070 = vmatprep.subr.bf16.mxu1 %v4246_v14  ;;  %4092 = vmatprep.subr.bf16.mxu0 %v4247_v15  ;;  %v4256_v14 = vld [vmem:[%s5733_s5 + $0x330] sm:$0xff]  }
 0x203   :  { %v4257_v15 = vld [vmem:[%s5733_s5 + $0x3b0] sm:$0xff]  }
 0x205   :  { %4071 = vmatpush3.bf16.msra.mxu1 %v4248_v61  ;;  %4093 = vmatpush3.bf16.msra.mxu0 %v4249_v16  ;;  %v4258_v61 = vld [vmem:[%s5733_s5 + $0x368] sm:$0xff]  }
 0x206   :  { %4100 = vmatprep.subr.bf16.mxu1 %v4250_v20  ;;  %4122 = vmatprep.subr.bf16.mxu0 %v4251_v21  ;;  %v4259_v16 = vld [vmem:[%s5733_s5 + $0x3e8] sm:$0xff]  }
 0x207   :  { %v4260_v20 = vld [vmem:[%s5733_s5 + $0x328] sm:$0xff]  }
 0x208   :  { %v4261_v21 = vld [vmem:[%s5733_s5 + $0x3a8] sm:$0xff]  }
 0x218   :  { %v1949_v25 = vpop.f32.mrf.mxu1 }
 0x219   :  { %v1992_v28 = vpop.f32.mrf.mxu0  ;;  %v1950_v32 = vadd.f32 %v1949_v25, %v418_v24  ;;  %v4264_v25 = vld [vmem:[%s5733_s5 + $0x320] sm:$0xff]  }
 0x21a   :  { %v1951_v29 = vpop.f32.mrf.mxu1  ;;  %v1993_v18 = vadd.f32 %v1992_v28, %v426_v27  ;;  %v4267_v28 = vld [vmem:[%s5733_s5 + $0x3d8] sm:$0xff]  }
 0x21b   :  { %v1952_v30 = vadd.f32 %v1951_v29, %v422_v23  ;;  %v1994_v31 = vpop.f32.mrf.mxu0  ;;  %v2095_v44 = vmax.f32 %v1950_v32, 0.0  ;;  %v4268_v29 = vld [vmem:[%s5733_s5 + $0x318] sm:$0xff]   ;;  %v4271_v32 = vld [vmem:[%s5733_s5 + $0x3d0] sm:$0xff]  }
 0x21c   :  { %v1995_v33 = vadd.f32 %v1994_v31, %v430_v26  ;;  %v1953_v34 = vpop.f32.mrf.mxu1  ;;  %v2097_v52 = vmax.f32 %v1993_v18, 0.0  ;;  %v4270_v31 = vld [vmem:[%s5733_s5 + $0x350] sm:$0xff]   ;;  %v4274_v18 = vld [vmem:[%s5733_s5 + $0x348] sm:$0xff]  }
 0x21d   :  { %v1954_v35 = vadd.f32 %v1953_v34, %v418_v24  ;;  %v1996_v36 = vpop.f32.mrf.mxu0  ;;  %v2096_v38 = vmax.f32 %v1952_v30, 0.0  ;;  %v2159_v4 = vmul.f32 %v2127_v51, %v2095_v44  ;;  %v4263_v24 = vld [vmem:[%s5733_s5 + $0x3e0] sm:$0xff]   ;;  %v4269_v30 = vld [vmem:[%s5733_s5 + $0x398] sm:$0xff]   ;;  %v4273_v34 = vld [vmem:[%s5733_s5 + $0x390] sm:$0xff]  }
 0x21e   :  { %v1997_v19 = vadd.f32 %v1996_v36, %v426_v27  ;;  %v1955_v37 = vpop.f32.mrf.mxu1  ;;  %v2098_v46 = vmax.f32 %v1995_v33, 0.0  ;;  %v2161_v7 = vmul.f32 %v2129_v62, %v2097_v52  ;;  %v4266_v27 = vld [vmem:[%s5733_s5 + $0x358] sm:$0xff]   ;;  %v4272_v33 = vld [vmem:[%s5733_s5 + $0x310] sm:$0xff]   ;;  %v4276_v36 = vld [vmem:[%s5733_s5 + $0x308] sm:$0xff]  }
 0x21f   :  { %v2111_v41 = vmax.f32 %v1954_v35, 0.0  ;;  %v1956_v43 = vadd.f32 %v1955_v37, %v422_v23  ;;  %v1998_v42 = vpop.f32.mrf.mxu0  ;;  %v2160_v1 = vmul.f32 %v2128_v45, %v2096_v38  ;;  %v4262_v23 = vld [vmem:[%s5733_s5 + $0x360] sm:$0xff]   ;;  %v4275_v35 = vld [vmem:[%s5733_s5 + $0x3c8] sm:$0xff]   ;;  %v446_v45 = vrot.slane %v5560_v22, %v413_v55 }
 0x220   :  { %v2113_v47 = vmax.f32 %v1997_v19, 0.0  ;;  %v1999_v50 = vadd.f32 %v1998_v42, %v430_v26  ;;  %v2162_v5 = vmul.f32 %v2130_v53, %v2098_v46  ;;  %v4265_v26 = vld [vmem:[%s5733_s5 + $0x3a0] sm:$0xff]   ;;  %v4277_v19 = vld [vmem:[%s5733_s5 + $0x388] sm:$0xff]   ;;  %v434_v42 = vrot.slane %v5560_v22, %v401_v57 }
 0x221   :  { %v2112_v56 = vmax.f32 %v1956_v43, 0.0  ;;  %v2175_v63 = vmul.f32 %v2143_v59, %v2111_v41  ;;  %v4278_v37 = vld [vmem:[%s5733_s5 + $0x340] sm:$0xff]   ;;  %v438_v43 = vrot.slane %v5560_v22, %v405_v54  ;;  %v442_v46 = vrot.slane %v5560_v22, %v409_v58 }
 0x222   :  { %v2114_v0 = vmax.f32 %v1999_v50, 0.0  ;;  %v2177_v2 = vmul.f32 %v2145_v48, %v2113_v47  ;;  %v4279_v38 = vld [vmem:[%s5733_s5 + $0x3c0] sm:$0xff]  }
 0x223   :  { %v2176_v3 = vmul.f32 %v2144_v49, %v2112_v56  ;;  %v2191_v10 = vpack.c.bf16 %v2175_v63, %v2159_v4  ;;  %v4280_v41 = vld [vmem:[%s5733_s5 + $0x300] sm:$0xff]   ;;  %v2149_v4 = vld [vmem:[%s5735_s7 + $0xf0] sm:$0xff] }
 0x224   :  { %v2178_v6 = vmul.f32 %v2146_v60, %v2114_v0  ;;  %v2193_v12 = vpack.c.bf16 %v2177_v2, %v2161_v7  ;;  %v4281_v59 = vld [vmem:[%s5733_s5 + $0x380] sm:$0xff]  }
 0x225   :  { %v2192_v8 = vpack.c.bf16 %v2176_v3, %v2160_v1  ;;  %v2132_v1 = vld [vmem:[%s5735_s7 + $0x68] sm:$0xff]  ;;  %v2131_v7 = vld [vmem:[%s5735_s7 + $0x60] sm:$0xff] }
 0x226   :  { %v2194_v39 = vpack.c.bf16 %v2178_v6, %v2162_v5  ;;  %v2148_v5 = vld [vmem:[%s5735_s7 + $0xe8] sm:$0xff] }
 0x227   :  { %3426 = vmatprep.mubr.bf16.mxu1 %v2192_v8 }
 0x228   :  { %3467 = vmatprep.mubr.bf16.mxu0 %v2194_v39  ;;  %3427 = vmatmul.mubr.bf16.vlgmr.msra.gmra.mxu1 %v2191_v10  ;;  %v2150_v39 = vld [vmem:[%s5735_s7 + $0xf8] sm:$0xff] }
 0x229   :  { %3468 = vmatmul.mubr.bf16.vlgmr.msra.gmra.mxu0 %v2193_v12  ;;  %4101 = vmatpush3.bf16.msra.mxu1 %v4252_v9  ;;  %v2134_v9 = vld [vmem:[%s5735_s7 + $0x78] sm:$0xff] }
 0x22a   :  { %4123 = vmatpush3.bf16.msra.mxu0 %v4253_v40  ;;  %4102 = vmatprep.subr.bf16.mxu1 %v4254_v11  ;;  %v2133_v40 = vld [vmem:[%s5735_s7 + $0x70] sm:$0xff] }
 0x22b   :  { %4124 = vmatprep.subr.bf16.mxu0 %v4255_v13 }
 0x22d   :  { %4103 = vmatpush3.bf16.msra.mxu1 %v4256_v14 }
 0x22e   :  { %4125 = vmatpush3.bf16.msra.mxu0 %v4257_v15  ;;  %4104 = vmatprep.subr.bf16.mxu1 %v4258_v61 }
 0x22f   :  { %4126 = vmatprep.subr.bf16.mxu0 %v4259_v16 }
 0x231   :  { %4105 = vmatpush3.bf16.msra.mxu1 %v4260_v20 }
 0x232   :  { %4127 = vmatpush3.bf16.msra.mxu0 %v4261_v21  ;;  %4106 = vmatprep.subr.bf16.mxu1 %v4262_v23 }
 0x233   :  { %4128 = vmatprep.subr.bf16.mxu0 %v4263_v24 }
 0x235   :  { %4107 = vmatpush3.bf16.msra.mxu1 %v4264_v25 }
 0x236   :  { %4129 = vmatpush3.bf16.msra.mxu0 %v4265_v26  ;;  %4108 = vmatprep.subr.bf16.mxu1 %v4266_v27 }
 0x237   :  { %4130 = vmatprep.subr.bf16.mxu0 %v4267_v28 }
 0x239   :  { %4109 = vmatpush3.bf16.msra.mxu1 %v4268_v29 }
 0x23a   :  { %4131 = vmatpush3.bf16.msra.mxu0 %v4269_v30  ;;  %4110 = vmatprep.subr.bf16.mxu1 %v4270_v31 }
 0x23b   :  { %4132 = vmatprep.subr.bf16.mxu0 %v4271_v32 }
 0x23d   :  { %4111 = vmatpush3.bf16.msra.mxu1 %v4272_v33 }
 0x23e   :  { %4133 = vmatpush3.bf16.msra.mxu0 %v4273_v34  ;;  %4112 = vmatprep.subr.bf16.mxu1 %v4274_v18 }
 0x23f   :  { %4134 = vmatprep.subr.bf16.mxu0 %v4275_v35 }
 0x241   :  { %4113 = vmatpush3.bf16.msra.mxu1 %v4276_v36 }
 0x242   :  { %4135 = vmatpush3.bf16.msra.mxu0 %v4277_v19  ;;  %4114 = vmatprep.subr.bf16.mxu1 %v4278_v37 }
 0x243   :  { %4136 = vmatprep.subr.bf16.mxu0 %v4279_v38 }
 0x245   :  { %4115 = vmatpush3.bf16.msra.mxu1 %v4280_v41 }
 0x246   :  { %4137 = vmatpush3.bf16.msra.mxu0 %v4281_v59 }
 0x258   :  { %v2035_v44 = vpop.f32.mrf.mxu1 }
 0x259   :  { %v2078_v47 = vpop.f32.mrf.mxu0  ;;  %v2036_v51 = vadd.f32 %v2035_v44, %v434_v42 }
 0x25a   :  { %v2037_v48 = vpop.f32.mrf.mxu1  ;;  %v2079_v53 = vadd.f32 %v2078_v47, %v442_v46 }
 0x25b   :  { %v2038_v49 = vadd.f32 %v2037_v48, %v438_v43  ;;  %v2080_v50 = vpop.f32.mrf.mxu0  ;;  %v2099_v22 = vmax.f32 %v2036_v51, 0.0 }
 0x25c   :  { %v2081_v52 = vadd.f32 %v2080_v50, %v446_v45  ;;  %v2039_v54 = vpop.f32.mrf.mxu1  ;;  %v2101_v8 = vmax.f32 %v2079_v53, 0.0 }
 0x25d   :  { %v2040_v56 = vadd.f32 %v2039_v54, %v434_v42  ;;  %v2082_v60 = vpop.f32.mrf.mxu0  ;;  %v2100_v63 = vmax.f32 %v2038_v49, 0.0  ;;  %v2163_v61 = vmul.f32 %v2131_v7, %v2099_v22 }
 0x25e   :  { %v2083_v57 = vadd.f32 %v2082_v60, %v442_v46  ;;  %v2041_v62 = vpop.f32.mrf.mxu1  ;;  %v2102_v2 = vmax.f32 %v2081_v52, 0.0  ;;  %v2165_v21 = vmul.f32 %v2133_v40, %v2101_v8 }
 0x25f   :  { %v2115_v0 = vmax.f32 %v2040_v56, 0.0  ;;  %v2042_v55 = vadd.f32 %v2041_v62, %v438_v43  ;;  %v2084_v58 = vpop.f32.mrf.mxu0  ;;  %v2164_v13 = vmul.f32 %v2132_v1, %v2100_v63  ;;  %v3839_v43 = vld [vmem:[%s5734_s6] ss:$0 sm:$0xff]  ;;  %s4309_s6 = smov [#allocation2]  }
 0x260   :  { %v2117_v3 = vmax.f32 %v2083_v57, 0.0  ;;  %v2085_v6 = vadd.f32 %v2084_v58, %v446_v45  ;;  %v2166_v16 = vmul.f32 %v2134_v9, %v2102_v2  ;;  %s3567_s18 = sshll.u32 %s4309_s6, 4  ;;  %s3568_s18 = int_to_ptr.vmem [resolvable:$true] %s3567_s18 }
 0x261   :  { %v2116_v10 = vmax.f32 %v2042_v55, 0.0  ;;  %v2179_v11 = vmul.f32 %v2147_v17, %v2115_v0  ;;  %s4286_s19 = scalar_lea.vmem %s3568_s18, 256  ;;  %p4291_p1 = scmp.lt.s32.totalorder %s3568_s18, %s3568_s18 }
 0x262   :  { %v2118_v12 = vmax.f32 %v2085_v6, 0.0  ;;  %v2181_v14 = vmul.f32 %v2149_v4, %v2117_v3  ;;  %p4287_p0 = scmp.ne.s32.totalorder %s3568_s18, %s4286_s19  ;;  %p4292_p2 = scmp.lt.s32.totalorder %s4286_s19, %s4286_s19 }
 0x263   :  { %v2180_v15 = vmul.f32 %v2148_v5, %v2116_v10  ;;  %v2195_v24 = vpack.c.bf16 %v2179_v11, %v2163_v61 }
 0x264   :  { %v2182_v20 = vmul.f32 %v2150_v39, %v2118_v12  ;;  %v2197_v26 = vpack.c.bf16 %v2181_v14, %v2165_v21  ;;  %p4293_p3 = por %p4292_p2, %p4291_p1 }
 0x265   :  { %v2196_v23 = vpack.c.bf16 %v2180_v15, %v2164_v13 }
 0x266   :  { %v2198_v25 = vpack.c.bf16 %v2182_v20, %v2166_v16  ;;  %p4294_p4 = pnand %p4293_p3, %p4287_p0 }
 0x267   :  { %3508 = vmatprep.mubr.bf16.mxu1 %v2196_v23 }
 0x268   :  { %3549 = vmatprep.mubr.bf16.mxu0 %v2198_v25  ;;  %3509 = vmatmul.mubr.bf16.vlgmr.msra.gmra.mxu1 %v2195_v24 }
 0x269   :  { %3550 = vmatmul.mubr.bf16.vlgmr.msra.gmra.mxu0 %v2197_v26 }
 0x278   :  { %v3984_v27 = vpop.f32.mrf.mxu1 }
 0x279   :  { %v4006_v28 = vpop.f32.mrf.mxu0 }
 0x27a   :  { %v3985_v29 = vpop.f32.mrf.mxu1 }
 0x27b   :  { %v4007_v30 = vpop.f32.mrf.mxu0  ;;  %v3986_v59 = vadd.f32 %v3985_v29, %v3984_v27 }
 0x27c   :  { %v3987_v31 = vpop.f32.mrf.mxu1  ;;  %v4008_v49 = vadd.f32 %v4007_v30, %v4006_v28 }
 0x27d   :  { %v4009_v32 = vpop.f32.mrf.mxu0  ;;  %v3265_v45 = vadd.f32 %v3986_v59, %v3839_v43 }
 0x27e   :  { %v3988_v33 = vpop.f32.mrf.mxu1 }
 0x27f   :  { %v4010_v18 = vpop.f32.mrf.mxu0  ;;  %v3989_v46 = vadd.f32 %v3988_v33, %v3987_v31  ;;  %v3306_v51 = vadd.f32 %v4008_v49, %v3265_v45 }
 0x280   :  { %v4011_v56 = vadd.f32 %v4010_v18, %v4009_v32 }
 0x281   :  { %v3268_v52 = vadd.f32 %v3989_v46, %v3839_v43 }
 0x283   :  { %v3309_v62 = vadd.f32 %v4011_v56, %v3268_v52 }
 0x2a8   :  { %v4028_v34 = vpop.f32.mrf.mxu1  ;;  %v4050_v35 = vpop.f32.mrf.mxu0 }
 0x2aa   :  { %v4029_v36 = vpop.f32.mrf.mxu1  ;;  %v4051_v19 = vpop.f32.mrf.mxu0 }
 0x2ab   :  { %v4030_v50 = vadd.f32 %v4029_v36, %v4028_v34  ;;  %v4052_v63 = vadd.f32 %v4051_v19, %v4050_v35 }
 0x2ac   :  { %v4031_v37 = vpop.f32.mrf.mxu1  ;;  %v4053_v38 = vpop.f32.mrf.mxu0 }
 0x2ad   :  { %v3347_v60 = vadd.f32 %v4030_v50, %v3306_v51 }
 0x2ae   :  { %v4032_v41 = vpop.f32.mrf.mxu1  ;;  %v4054_v44 = vpop.f32.mrf.mxu0 }
 0x2af   :  { %v4033_v57 = vadd.f32 %v4032_v41, %v4031_v37  ;;  %v3388_v58 = vadd.f32 %v4052_v63, %v3347_v60  ;;  %v4055_v1 = vadd.f32 %v4054_v44, %v4053_v38 }
 0x2b1   :  { %v3350_v22 = vadd.f32 %v4033_v57, %v3309_v62 }
 0x2b3   :  { %v3391_v6 = vadd.f32 %v4055_v1, %v3350_v22 }
 0x2e8   :  { %v4072_v42 = vpop.f32.mrf.mxu1 }
 0x2e9   :  { %v4094_v47 = vpop.f32.mrf.mxu0 }
 0x2ea   :  { %v4073_v48 = vpop.f32.mrf.mxu1 }
 0x2eb   :  { %v4095_v54 = vpop.f32.mrf.mxu0  ;;  %v4074_v0 = vadd.f32 %v4073_v48, %v4072_v42 }
 0x2ec   :  { %v4075_v53 = vpop.f32.mrf.mxu1  ;;  %v4096_v7 = vadd.f32 %v4095_v54, %v4094_v47 }
 0x2ed   :  { %v4097_v17 = vpop.f32.mrf.mxu0  ;;  %v3429_v2 = vadd.f32 %v4074_v0, %v3388_v58 }
 0x2ee   :  { %v4076_v55 = vpop.f32.mrf.mxu1 }
 0x2ef   :  { %v4077_v3 = vadd.f32 %v4076_v55, %v4075_v53  ;;  %v4098_v4 = vpop.f32.mrf.mxu0  ;;  %v3470_v10 = vadd.f32 %v4096_v7, %v3429_v2 }
 0x2f0   :  { %v4099_v13 = vadd.f32 %v4098_v4, %v4097_v17 }
 0x2f1   :  { %v3432_v39 = vadd.f32 %v4077_v3, %v3391_v6 }
 0x2f3   :  { %v3473_v20 = vadd.f32 %v4099_v13, %v3432_v39 }
 0x328   :  { %v4116_v5 = vpop.f32.mrf.mxu1 }
 0x329   :  { %v4138_v8 = vpop.f32.mrf.mxu0 }
 0x32a   :  { %v4117_v9 = vpop.f32.mrf.mxu1 }
 0x32b   :  { %v4118_v40 = vadd.f32 %v4117_v9, %v4116_v5  ;;  %v4139_v11 = vpop.f32.mrf.mxu0 }
 0x32c   :  { %v4119_v12 = vpop.f32.mrf.mxu1  ;;  %v4140_v15 = vadd.f32 %v4139_v11, %v4138_v8 }
 0x32d   :  { %v3511_v14 = vadd.f32 %v4118_v40, %v3470_v10  ;;  %v4141_v61 = vpop.f32.mrf.mxu0 }
 0x32e   :  { %v4120_v16 = vpop.f32.mrf.mxu1 }
 0x32f   :  { %v3552_v21 = vadd.f32 %v4140_v15, %v3511_v14  ;;  %v4121_v23 = vadd.f32 %v4120_v16, %v4119_v12  ;;  %v4142_v24 = vpop.f32.mrf.mxu0 }
 0x330   :  { %v4143_v26 = vadd.f32 %v4142_v24, %v4141_v61 }
 0x331   :  { %4282 = vtanh.f32 %v3552_v21  ;;  %v3514_v25 = vadd.f32 %v4121_v23, %v3473_v20 }
 0x333   :  { %v3555_v27 = vadd.f32 %v4143_v26, %v3514_v25 }
 0x335   :  { %4284 = vtanh.f32 %v3555_v27 }
 0x33e   :  { %v4283_v28 = vpop.eup %4282 }
 0x33f   :  { %3560 = vst [vmem:[#allocation2] sm:$0xff] %v4283_v28 }
 0x342   :  { %v4285_v29 = vpop.eup %4284 }
 0x343   :  { %3561 = vst [vmem:[#allocation2 + $0x8] sm:$0xff] %v4285_v29 }
 0x344   :  { %4297 = shalt.err (!%p4294_p4)
}
 0x345   :  { %s4310_s20 = smov 128   ;;  %s4311_s1 = smov 8  }
 0x346   :  { %3573 = dma.vmem_to_hbm [thread:$0]  %s3568_s18, 256, %s5736_s8, [#allocation3], %s4310_s20, %s4310_s20, %s4311_s1  }
 0x347   :  { %4306 = dma.done.wait [#allocation3], 256  }
 0x348   :  { %4307 = vsyncadd [#allocation3], 4294967040 }
 0x349   :  { %3577 = vsyncpa [#allocation3], 1 }

</bundles_post_ra>
